<compile_context>
chip_gen: v6e
topology: v6e:2x2x1
jax: 0.10.0
libtpu: 0.0.40
codegen_flags: <defaults>
</compile_context>

<pallas_src>
import functools
import math

import jax
import jax.numpy as jnp
from jax import lax
from jax.experimental import pallas as pl
from jax.experimental.pallas import tpu as pltpu

EPS = 1e-6  # LayerNorm eps from the Annotated Transformer

# Stacked (leading layer axis) parameter order fed to the fused kernel.
STACKED_ORDER = ("wqkv", "bqkv", "wo", "bo",
                 "w1", "b1", "w2", "b2",
                 "g0", "be0", "g1", "be1")


# ----------------------------------------------------------------------------
# in-kernel helpers
# ----------------------------------------------------------------------------
def _layernorm(x, gamma, beta):
    # Annotated-Transformer LayerNorm: unbiased std (torch .std default) and
    # eps added to std (not variance).
    d = x.shape[-1]
    mean = jnp.mean(x, axis=-1, keepdims=True)
    centered = x - mean
    var = jnp.sum(centered * centered, axis=-1, keepdims=True) / (d - 1)
    std = jnp.sqrt(var)
    inv = pl.reciprocal(std + EPS, approx=True)     # EUP slot, frees VALU
    return gamma * centered * inv + beta


# ----------------------------------------------------------------------------
# fused Pallas kernel: grid = (batch_block, layer); activation carried in VMEM
# ----------------------------------------------------------------------------
def encoder_stack_kernel(x_ref, mask_ref,
                         wqkv_ref, bqkv_ref, wo_ref, bo_ref,
                         w1_ref, b1_ref, w2_ref, b2_ref,
                         g0_ref, be0_ref, g1_ref, be1_ref,
                         fg_ref, fb_ref,
                         o_ref,
                         carry_ref,
                         *, d_model, n_heads, seq_len, batch_block):
    d_k = d_model // n_heads
    layer = pl.program_id(1)
    n_layers = pl.num_programs(1)

    # Load the input activation into the VMEM carry on the first layer only.
    @pl.when(layer == 0)
    def _():
        carry_ref[...] = x_ref[...]

    x = carry_ref[...]                                  # (Bb*S, D)

    # Additive key-mask bias, computed once per layer (hoisted out of the
    # per-(batch, head) loop).
    bias = jnp.where(mask_ref[...] == 0.0,
                     jnp.float32(-1e9), jnp.float32(0.0))   # (Bb, 1, S)

    # ---- sublayer 0: x + self_attn(norm(x), mask) ---------------------------
    xn = _layernorm(x, g0_ref[...], be0_ref[...])
    # Fused QKV projection: one (Bb*S, D) @ (D, 3D) MXU matmul.
    qkv = jnp.dot(xn, wqkv_ref[...],
                  preferred_element_type=jnp.float32) + bqkv_ref[...]
    q = qkv[:, 0:d_model]
    k = qkv[:, d_model:2 * d_model]
    v = qkv[:, 2 * d_model:3 * d_model]

    scale = 1.0 / math.sqrt(d_k)
    ctx_rows = []
    for b in range(batch_block):                        # static unroll over batch
        rs = b * seq_len
        bias_b = bias[b]                                # (1, S)
        heads = []
        for h in range(n_heads):                        # static unroll over heads
            lo = h * d_k
            qh = q[rs:rs + seq_len, lo:lo + d_k]        # (S, d_k)
            kh = k[rs:rs + seq_len, lo:lo + d_k]
            vh = v[rs:rs + seq_len, lo:lo + d_k]
            # scores = qh @ kh.T * scale + mask_bias (contract on d_k, no transpose)
            scores = lax.dot_general(qh, kh, (((1,), (1,)), ((), ())),
                                     preferred_element_type=jnp.float32) * scale + bias_b
            scores = scores - jnp.max(scores, axis=-1, keepdims=True)
            p = jnp.exp(scores)
            p = p * pl.reciprocal(jnp.sum(p, axis=-1, keepdims=True), approx=True)
            heads.append(jnp.dot(p, vh, preferred_element_type=jnp.float32))
        ctx_rows.append(jnp.concatenate(heads, axis=-1))   # (S, D)
    ctx = jnp.concatenate(ctx_rows, axis=0)             # (Bb*S, D)
    # Single full-width output projection (K = D, M = Bb*S fills the MXU).
    attn = jnp.dot(ctx, wo_ref[...],
                   preferred_element_type=jnp.float32) + bo_ref[...]
    x = x + attn                                        # residual

    # ---- sublayer 1: x + ffn(norm(x)) ---------------------------------------
    xn2 = _layernorm(x, g1_ref[...], be1_ref[...])
    h1 = jnp.dot(xn2, w1_ref[...],
                 preferred_element_type=jnp.float32) + b1_ref[...]
    h1 = jnp.maximum(h1, 0.0)                           # ReLU
    ff = jnp.dot(h1, w2_ref[...],
                 preferred_element_type=jnp.float32) + b2_ref[...]
    x = x + ff                                          # residual

    carry_ref[...] = x                                  # carry to next layer

    # Final `Encoder.norm`, applied only after the last layer; this is also the
    # only HBM writeback of the activation.
    @pl.when(layer == n_layers - 1)
    def _():
        o_ref[...] = _layernorm(x, fg_ref[...], fb_ref[...])


# ----------------------------------------------------------------------------
# wrapper: stack per-layer params, one pallas_call for the whole encoder
# ----------------------------------------------------------------------------
def _stack_params(layer_params):
    """Stack per-layer dicts along a leading layer axis; fuse Wq|Wk|Wv."""
    stacked = {
        "wqkv": jnp.stack([jnp.concatenate([p["wq"], p["wk"], p["wv"]], axis=1)
                           for p in layer_params]),
        "bqkv": jnp.stack([jnp.concatenate([p["bq"], p["bk"], p["bv"]], axis=1)
                           for p in layer_params]),
    }
    for name in ("wo", "bo", "w1", "b1", "w2", "b2", "g0", "be0", "g1", "be1"):
        stacked[name] = jnp.stack([p[name] for p in layer_params])
    return stacked


def encoder_forward(x, mask, layer_params, final_gamma, final_beta, *,
                    n_heads, batch_block=None):
    B, S, D = x.shape
    n_layers = len(layer_params)
    if batch_block is None:
        batch_block = B            # whole batch per grid step at these shapes
    assert B % batch_block == 0
    stacked = _stack_params(layer_params)

    # Flatten batch into the matmul M dimension (free host-side reshape);
    # requires S lane layout untouched (last dim unchanged).
    x2 = x.reshape(B * S, D)

    def wspec(name):
        _, r, c = stacked[name].shape
        # Leading (layer) dim squeezed; indexed by the layer grid axis so the
        # next layer's weights stream in while the current layer computes.
        return pl.BlockSpec((None, r, c), lambda b, l: (l, 0, 0))

    kernel = functools.partial(encoder_stack_kernel, d_model=D, n_heads=n_heads,
                               seq_len=S, batch_block=batch_block)

    out2 = pl.pallas_call(
        kernel,
        out_shape=jax.ShapeDtypeStruct((B * S, D), jnp.float32),
        grid=(B // batch_block, n_layers),
        in_specs=[pl.BlockSpec((batch_block * S, D), lambda b, l: (b, 0)),    # x (flat)
                  pl.BlockSpec((batch_block, 1, S), lambda b, l: (b, 0, 0))]  # mask
                 + [wspec(name) for name in STACKED_ORDER]
                 + [pl.BlockSpec((1, D), lambda b, l: (0, 0)),                # final gamma
                    pl.BlockSpec((1, D), lambda b, l: (0, 0))],               # final beta
        out_specs=pl.BlockSpec((batch_block * S, D), lambda b, l: (b, 0)),
        scratch_shapes=[pltpu.VMEM((batch_block * S, D), jnp.float32)],       # activation carry
        compiler_params=pltpu.CompilerParams(
            dimension_semantics=("parallel", "arbitrary")),
    )(x2, mask, *(stacked[name] for name in STACKED_ORDER),
      final_gamma, final_beta)
    return out2.reshape(B, S, D)


# ----------------------------------------------------------------------------
# deterministic parameter construction (synthetic init; torch Linear weights
# are stored (out,in) -- here we keep them pre-transposed as (in,out) so the
# kernel computes x @ W + b == torch's x @ W.T + b)
# ----------------------------------------------------------------------------
def init_params(key, n_layers, d_model, d_ff):
    def linear(k, fan_in, fan_out, scale=0.05):
        kw, kb = jax.random.split(k)
        w = jax.random.normal(kw, (fan_in, fan_out), jnp.float32) * scale
        b = jax.random.normal(kb, (1, fan_out), jnp.float32) * scale
        return w, b

    layers = []
    for i in range(n_layers):
        lk = jax.random.fold_in(key, i)
        ks = jax.random.split(lk, 6)
        p = {}
        p["wq"], p["bq"] = linear(ks[0], d_model, d_model)
        p["wk"], p["bk"] = linear(ks[1], d_model, d_model)
        p["wv"], p["bv"] = linear(ks[2], d_model, d_model)
        p["wo"], p["bo"] = linear(ks[3], d_model, d_model)
        p["w1"], p["b1"] = linear(ks[4], d_model, d_ff)
        p["w2"], p["b2"] = linear(ks[5], d_ff, d_model)
        p["g0"] = jnp.ones((1, d_model), jnp.float32)
        p["be0"] = jnp.zeros((1, d_model), jnp.float32)
        p["g1"] = jnp.ones((1, d_model), jnp.float32)
        p["be1"] = jnp.zeros((1, d_model), jnp.float32)
        layers.append(p)
    fg = jnp.ones((1, d_model), jnp.float32)
    fb = jnp.zeros((1, d_model), jnp.float32)
    return layers, fg, fb


# ----------------------------------------------------------------------------
# pure-JAX reference (mirrors the PyTorch forward exactly) for validation
# ----------------------------------------------------------------------------
def ref_layernorm(x, g, b):
    mean = x.mean(-1, keepdims=True)
    std = jnp.sqrt(((x - mean) ** 2).sum(-1, keepdims=True) / (x.shape[-1] - 1))
    return g * (x - mean) / (std + EPS) + b


def ref_encoder(x, mask, layer_params, fg, fb, n_heads):
    B, S, D = x.shape
    d_k = D // n_heads
    m4 = mask[:, :, None, :]  # (B,1,1,S)
    for p in layer_params:
        xn = ref_layernorm(x, p["g0"], p["be0"])
        q = xn @ p["wq"] + p["bq"]
        k = xn @ p["wk"] + p["bk"]
        v = xn @ p["wv"] + p["bv"]

        def split(t):
            return t.reshape(B, S, n_heads, d_k).transpose(0, 2, 1, 3)

        qh, kh, vh = split(q), split(k), split(v)
        scores = qh @ kh.transpose(0, 1, 3, 2) / math.sqrt(d_k)
        scores = jnp.where(m4 == 0.0, -1e9, scores)
        p_attn = jax.nn.softmax(scores, axis=-1)
        attn = (p_attn @ vh).transpose(0, 2, 1, 3).reshape(B, S, D)
        attn = attn @ p["wo"] + p["bo"]
        x = x + attn
        xn2 = ref_layernorm(x, p["g1"], p["be1"])
        ff = jnp.maximum(xn2 @ p["w1"] + p["b1"], 0.0) @ p["w2"] + p["b2"]
        x = x + ff
    return ref_layernorm(x, fg, fb)


# ----------------------------------------------------------------------------
if __name__ == "__main__":
    # Small but lane-dense shapes: d_model multiple of 128 keeps vector stores
    # unmasked; everything else stays tiny.
    B, S, D, H, DFF, N = 2, 8, 128, 4, 256, 2

    key = jax.random.PRNGKey(0)
    kx, kp = jax.random.split(key)
    x = jax.random.normal(kx, (B, S, D), jnp.float32)
    mask = jnp.ones((B, 1, S), jnp.float32)
    mask = mask.at[1, 0, S - 2:].set(0.0)  # mask out last two keys of batch 1

    layer_params, fg, fb = init_params(kp, N, D, DFF)

    out = encoder_forward(x, mask, layer_params, fg, fb, n_heads=H)
    out = jax.block_until_ready(out)

    ref = ref_encoder(x, mask, layer_params, fg, fb, H)
    assert out.shape == (B, S, D)
    # Tolerance accounts for the EUP approximate-reciprocal in softmax/LayerNorm
    # (exact-division reference); still tight enough to catch structural bugs.
    assert jnp.allclose(out, ref, atol=5e-3, rtol=5e-3), \
        f"max abs err {jnp.max(jnp.abs(out - ref))}"

    print("KERNEL_OK")
</pallas_src>

<mosaic_0001>
module attributes {stable_mosaic.version = 11 : i64} {
  func.func @encoder_stack_kernel(%arg0: i32, %arg1: i32, %arg2: memref<16x128xf32, #tpu.memory_space<vmem>>, %arg3: memref<2x1x8xf32, #tpu.memory_space<vmem>>, %arg4: memref<1x128x384xf32, #tpu.memory_space<vmem>>, %arg5: memref<1x1x384xf32, #tpu.memory_space<vmem>>, %arg6: memref<1x128x128xf32, #tpu.memory_space<vmem>>, %arg7: memref<1x1x128xf32, #tpu.memory_space<vmem>>, %arg8: memref<1x128x256xf32, #tpu.memory_space<vmem>>, %arg9: memref<1x1x256xf32, #tpu.memory_space<vmem>>, %arg10: memref<1x256x128xf32, #tpu.memory_space<vmem>>, %arg11: memref<1x1x128xf32, #tpu.memory_space<vmem>>, %arg12: memref<1x1x128xf32, #tpu.memory_space<vmem>>, %arg13: memref<1x1x128xf32, #tpu.memory_space<vmem>>, %arg14: memref<1x1x128xf32, #tpu.memory_space<vmem>>, %arg15: memref<1x1x128xf32, #tpu.memory_space<vmem>>, %arg16: memref<1x128xf32, #tpu.memory_space<vmem>>, %arg17: memref<1x128xf32, #tpu.memory_space<vmem>>, %arg18: memref<16x128xf32, #tpu.memory_space<vmem>>, %arg19: memref<16x128xf32, #tpu.memory_space<vmem>>) attributes {dimension_semantics = [#tpu.dimension_semantics<parallel>, #tpu.dimension_semantics<arbitrary>], iteration_bounds = array<i64: 1, 2>, scalar_prefetch = 0 : i64, scratch_operands = 1 : i64, tpu.core_type = #tpu.core_type<tc>, window_params = [{transform_indices = @transform_0, window_bounds = array<i64: 16, 128>}, {transform_indices = @transform_1, window_bounds = array<i64: 2, 1, 8>}, {transform_indices = @transform_2, window_bounds = array<i64: 1, 128, 384>}, {transform_indices = @transform_3, window_bounds = array<i64: 1, 1, 384>}, {transform_indices = @transform_4, window_bounds = array<i64: 1, 128, 128>}, {transform_indices = @transform_5, window_bounds = array<i64: 1, 1, 128>}, {transform_indices = @transform_6, window_bounds = array<i64: 1, 128, 256>}, {transform_indices = @transform_7, window_bounds = array<i64: 1, 1, 256>}, {transform_indices = @transform_8, window_bounds = array<i64: 1, 256, 128>}, {transform_indices = @transform_9, window_bounds = array<i64: 1, 1, 128>}, {transform_indices = @transform_10, window_bounds = array<i64: 1, 1, 128>}, {transform_indices = @transform_11, window_bounds = array<i64: 1, 1, 128>}, {transform_indices = @transform_12, window_bounds = array<i64: 1, 1, 128>}, {transform_indices = @transform_13, window_bounds = array<i64: 1, 1, 128>}, {pipeline_mode = #tpu.pipeline_mode<synchronous>, transform_indices = @transform_14, window_bounds = array<i64: 1, 128>}, {pipeline_mode = #tpu.pipeline_mode<synchronous>, transform_indices = @transform_15, window_bounds = array<i64: 1, 128>}, {transform_indices = @transform_16, window_bounds = array<i64: 16, 128>}]} {
    %c0_i32 = arith.constant 0 : i32
    %0 = arith.cmpi eq, %arg1, %c0_i32 : i32
    %1 = arith.extui %0 : i1 to i32
    %c0_i32_0 = arith.constant 0 : i32
    %2 = arith.cmpi ne, %1, %c0_i32_0 : i32
    scf.if %2 {
      %c0_101 = arith.constant 0 : index
      %c0_102 = arith.constant 0 : index
      %258 = vector.load %arg2[%c0_101, %c0_102] : memref<16x128xf32, #tpu.memory_space<vmem>>, vector<16x128xf32>
      %c0_103 = arith.constant 0 : index
      %c0_104 = arith.constant 0 : index
      %259 = vector.load %arg19[%c0_103, %c0_104] : memref<16x128xf32, #tpu.memory_space<vmem>>, vector<16x128xf32>
      tpu.vector_store %arg19[%c0_103, %c0_104], %258 {strides = array<i32>} : memref<16x128xf32, #tpu.memory_space<vmem>>, vector<16x128xf32>,
    } else {
    }
    %c0 = arith.constant 0 : index
    %c0_1 = arith.constant 0 : index
    %3 = vector.load %arg19[%c0, %c0_1] : memref<16x128xf32, #tpu.memory_space<vmem>>, vector<16x128xf32>
    %c0_2 = arith.constant 0 : index
    %c0_3 = arith.constant 0 : index
    %c0_4 = arith.constant 0 : index
    %4 = vector.load %arg3[%c0_2, %c0_3, %c0_4] : memref<2x1x8xf32, #tpu.memory_space<vmem>>, vector<2x1x8xf32>
    %cst = arith.constant 0.000000e+00 : f32
    %5 = vector.broadcast %cst : f32 to vector<2x1x8xf32>
    %6 = arith.cmpf oeq, %4, %5 : vector<2x1x8xf32>
    %cst_5 = arith.constant -1.000000e+09 : f32
    %cst_6 = arith.constant 0.000000e+00 : f32
    %7 = vector.broadcast %cst_5 : f32 to vector<2x1x8xf32>
    %8 = vector.broadcast %cst_6 : f32 to vector<2x1x8xf32>
    %9 = arith.select %6, %7, %8 : vector<2x1x8xi1>, vector<2x1x8xf32>
    %c0_7 = arith.constant 0 : index
    %c0_8 = arith.constant 0 : index
    %c0_9 = arith.constant 0 : index
    %10 = vector.load %arg12[%c0_7, %c0_8, %c0_9] : memref<1x1x128xf32, #tpu.memory_space<vmem>>, vector<1x1x128xf32>
    %11 = vector.shape_cast %10 : vector<1x1x128xf32> to vector<1x128xf32>
    %c0_10 = arith.constant 0 : index
    %c0_11 = arith.constant 0 : index
    %c0_12 = arith.constant 0 : index
    %12 = vector.load %arg13[%c0_10, %c0_11, %c0_12] : memref<1x1x128xf32, #tpu.memory_space<vmem>>, vector<1x1x128xf32>
    %13 = vector.shape_cast %12 : vector<1x1x128xf32> to vector<1x128xf32>
    %cst_13 = arith.constant dense<0.000000e+00> : vector<16xf32>
    %14 = vector.multi_reduction <add>, %3, %cst_13 [1] : vector<16x128xf32> to vector<16xf32>
    %15 = vector.shape_cast %14 : vector<16xf32> to vector<16x1xf32>
    %cst_14 = arith.constant 1.280000e+02 : f32
    %16 = vector.broadcast %cst_14 : f32 to vector<16x1xf32>
    %17 = arith.divf %15, %16 : vector<16x1xf32>
    %18 = vector.broadcast %17 : vector<16x1xf32> to vector<16x128xf32>
    %19 = arith.subf %3, %18 : vector<16x128xf32>
    %20 = arith.mulf %19, %19 : vector<16x128xf32>
    %cst_15 = arith.constant dense<0.000000e+00> : vector<16xf32>
    %21 = vector.multi_reduction <add>, %20, %cst_15 [1] : vector<16x128xf32> to vector<16xf32>
    %22 = vector.shape_cast %21 : vector<16xf32> to vector<16x1xf32>
    %cst_16 = arith.constant 1.270000e+02 : f32
    %23 = vector.broadcast %cst_16 : f32 to vector<16x1xf32>
    %24 = arith.divf %22, %23 : vector<16x1xf32>
    %25 = math.sqrt %24 : vector<16x1xf32>
    %cst_17 = arith.constant 9.99999997E-7 : f32
    %26 = vector.broadcast %cst_17 : f32 to vector<16x1xf32>
    %27 = arith.addf %25, %26 : vector<16x1xf32>
    %28 = tpu.reciprocal %27 {approx = true} : vector<16x1xf32> -> vector<16x1xf32>
    %29 = vector.broadcast %11 : vector<1x128xf32> to vector<16x128xf32>
    %30 = arith.mulf %29, %19 : vector<16x128xf32>
    %31 = vector.broadcast %28 : vector<16x1xf32> to vector<16x128xf32>
    %32 = arith.mulf %30, %31 : vector<16x128xf32>
    %33 = vector.broadcast %13 : vector<1x128xf32> to vector<16x128xf32>
    %34 = arith.addf %32, %33 : vector<16x128xf32>
    %c0_18 = arith.constant 0 : index
    %c0_19 = arith.constant 0 : index
    %c0_20 = arith.constant 0 : index
    %35 = vector.load %arg4[%c0_18, %c0_19, %c0_20] : memref<1x128x384xf32, #tpu.memory_space<vmem>>, vector<1x128x384xf32>
    %36 = vector.shape_cast %35 : vector<1x128x384xf32> to vector<128x384xf32>
    %cst_21 = arith.constant dense<0.000000e+00> : vector<16x384xf32>
    %37 = tpu.matmul %34, %36, %cst_21 {dimension_numbers = #tpu.dot_dimension_numbers<[1], [0], [0], [1], [0, 0, 1, 1], [], []>} : vector<16x128xf32>, vector<128x384xf32>, vector<16x384xf32> -> vector<16x384xf32>
    %c0_22 = arith.constant 0 : index
    %c0_23 = arith.constant 0 : index
    %c0_24 = arith.constant 0 : index
    %38 = vector.load %arg5[%c0_22, %c0_23, %c0_24] : memref<1x1x384xf32, #tpu.memory_space<vmem>>, vector<1x1x384xf32>
    %39 = vector.shape_cast %38 : vector<1x1x384xf32> to vector<1x384xf32>
    %40 = vector.broadcast %39 : vector<1x384xf32> to vector<16x384xf32>
    %41 = arith.addf %37, %40 : vector<16x384xf32>
    %42 = vector.extract_strided_slice %41 {offsets = [0, 0], sizes = [16, 128], strides = [1, 1]} : vector<16x384xf32> to vector<16x128xf32>
    %43 = vector.extract_strided_slice %41 {offsets = [0, 128], sizes = [16, 128], strides = [1, 1]} : vector<16x384xf32> to vector<16x128xf32>
    %44 = vector.extract_strided_slice %41 {offsets = [0, 256], sizes = [16, 128], strides = [1, 1]} : vector<16x384xf32> to vector<16x128xf32>
    %45 = vector.extract_strided_slice %9 {offsets = [0, 0, 0], sizes = [1, 1, 8], strides = [1, 1, 1]} : vector<2x1x8xf32> to vector<1x1x8xf32>
    %46 = vector.shape_cast %45 : vector<1x1x8xf32> to vector<1x8xf32>
    %47 = vector.extract_strided_slice %42 {offsets = [0, 0], sizes = [8, 32], strides = [1, 1]} : vector<16x128xf32> to vector<8x32xf32>
    %48 = vector.extract_strided_slice %43 {offsets = [0, 0], sizes = [8, 32], strides = [1, 1]} : vector<16x128xf32> to vector<8x32xf32>
    %49 = vector.extract_strided_slice %44 {offsets = [0, 0], sizes = [8, 32], strides = [1, 1]} : vector<16x128xf32> to vector<8x32xf32>
    %cst_25 = arith.constant dense<0.000000e+00> : vector<8x8xf32>
    %50 = tpu.matmul %47, %48, %cst_25 {dimension_numbers = #tpu.dot_dimension_numbers<[1], [1], [0], [0], [0, 0, 1, 0], [], []>} : vector<8x32xf32>, vector<8x32xf32>, vector<8x8xf32> -> vector<8x8xf32>
    %cst_26 = arith.constant 0.176776692 : f32
    %51 = vector.broadcast %cst_26 : f32 to vector<8x8xf32>
    %52 = arith.mulf %50, %51 : vector<8x8xf32>
    %53 = vector.broadcast %46 : vector<1x8xf32> to vector<8x8xf32>
    %54 = arith.addf %52, %53 : vector<8x8xf32>
    %cst_27 = arith.constant dense<0xFF800000> : vector<8xf32>
    %55 = vector.multi_reduction <maximumf>, %54, %cst_27 [1] : vector<8x8xf32> to vector<8xf32>
    %56 = vector.shape_cast %55 : vector<8xf32> to vector<8x1xf32>
    %57 = vector.broadcast %56 : vector<8x1xf32> to vector<8x8xf32>
    %58 = arith.subf %54, %57 : vector<8x8xf32>
    %59 = math.exp %58 : vector<8x8xf32>
    %cst_28 = arith.constant dense<0.000000e+00> : vector<8xf32>
    %60 = vector.multi_reduction <add>, %59, %cst_28 [1] : vector<8x8xf32> to vector<8xf32>
    %61 = vector.shape_cast %60 : vector<8xf32> to vector<8x1xf32>
    %62 = tpu.reciprocal %61 {approx = true} : vector<8x1xf32> -> vector<8x1xf32>
    %63 = vector.broadcast %62 : vector<8x1xf32> to vector<8x8xf32>
    %64 = arith.mulf %59, %63 : vector<8x8xf32>
    %cst_29 = arith.constant dense<0.000000e+00> : vector<8x32xf32>
    %65 = tpu.matmul %64, %49, %cst_29 {dimension_numbers = #tpu.dot_dimension_numbers<[1], [0], [0], [1], [0, 0, 1, 1], [], []>} : vector<8x8xf32>, vector<8x32xf32>, vector<8x32xf32> -> vector<8x32xf32>
    %66 = vector.extract_strided_slice %42 {offsets = [0, 32], sizes = [8, 32], strides = [1, 1]} : vector<16x128xf32> to vector<8x32xf32>
    %67 = vector.extract_strided_slice %43 {offsets = [0, 32], sizes = [8, 32], strides = [1, 1]} : vector<16x128xf32> to vector<8x32xf32>
    %68 = vector.extract_strided_slice %44 {offsets = [0, 32], sizes = [8, 32], strides = [1, 1]} : vector<16x128xf32> to vector<8x32xf32>
    %cst_30 = arith.constant dense<0.000000e+00> : vector<8x8xf32>
    %69 = tpu.matmul %66, %67, %cst_30 {dimension_numbers = #tpu.dot_dimension_numbers<[1], [1], [0], [0], [0, 0, 1, 0], [], []>} : vector<8x32xf32>, vector<8x32xf32>, vector<8x8xf32> -> vector<8x8xf32>
    %cst_31 = arith.constant 0.176776692 : f32
    %70 = vector.broadcast %cst_31 : f32 to vector<8x8xf32>
    %71 = arith.mulf %69, %70 : vector<8x8xf32>
    %72 = vector.broadcast %46 : vector<1x8xf32> to vector<8x8xf32>
    %73 = arith.addf %71, %72 : vector<8x8xf32>
    %cst_32 = arith.constant dense<0xFF800000> : vector<8xf32>
    %74 = vector.multi_reduction <maximumf>, %73, %cst_32 [1] : vector<8x8xf32> to vector<8xf32>
    %75 = vector.shape_cast %74 : vector<8xf32> to vector<8x1xf32>
    %76 = vector.broadcast %75 : vector<8x1xf32> to vector<8x8xf32>
    %77 = arith.subf %73, %76 : vector<8x8xf32>
    %78 = math.exp %77 : vector<8x8xf32>
    %cst_33 = arith.constant dense<0.000000e+00> : vector<8xf32>
    %79 = vector.multi_reduction <add>, %78, %cst_33 [1] : vector<8x8xf32> to vector<8xf32>
    %80 = vector.shape_cast %79 : vector<8xf32> to vector<8x1xf32>
    %81 = tpu.reciprocal %80 {approx = true} : vector<8x1xf32> -> vector<8x1xf32>
    %82 = vector.broadcast %81 : vector<8x1xf32> to vector<8x8xf32>
    %83 = arith.mulf %78, %82 : vector<8x8xf32>
    %cst_34 = arith.constant dense<0.000000e+00> : vector<8x32xf32>
    %84 = tpu.matmul %83, %68, %cst_34 {dimension_numbers = #tpu.dot_dimension_numbers<[1], [0], [0], [1], [0, 0, 1, 1], [], []>} : vector<8x8xf32>, vector<8x32xf32>, vector<8x32xf32> -> vector<8x32xf32>
    %85 = vector.extract_strided_slice %42 {offsets = [0, 64], sizes = [8, 32], strides = [1, 1]} : vector<16x128xf32> to vector<8x32xf32>
    %86 = vector.extract_strided_slice %43 {offsets = [0, 64], sizes = [8, 32], strides = [1, 1]} : vector<16x128xf32> to vector<8x32xf32>
    %87 = vector.extract_strided_slice %44 {offsets = [0, 64], sizes = [8, 32], strides = [1, 1]} : vector<16x128xf32> to vector<8x32xf32>
    %cst_35 = arith.constant dense<0.000000e+00> : vector<8x8xf32>
    %88 = tpu.matmul %85, %86, %cst_35 {dimension_numbers = #tpu.dot_dimension_numbers<[1], [1], [0], [0], [0, 0, 1, 0], [], []>} : vector<8x32xf32>, vector<8x32xf32>, vector<8x8xf32> -> vector<8x8xf32>
    %cst_36 = arith.constant 0.176776692 : f32
    %89 = vector.broadcast %cst_36 : f32 to vector<8x8xf32>
    %90 = arith.mulf %88, %89 : vector<8x8xf32>
    %91 = vector.broadcast %46 : vector<1x8xf32> to vector<8x8xf32>
    %92 = arith.addf %90, %91 : vector<8x8xf32>
    %cst_37 = arith.constant dense<0xFF800000> : vector<8xf32>
    %93 = vector.multi_reduction <maximumf>, %92, %cst_37 [1] : vector<8x8xf32> to vector<8xf32>
    %94 = vector.shape_cast %93 : vector<8xf32> to vector<8x1xf32>
    %95 = vector.broadcast %94 : vector<8x1xf32> to vector<8x8xf32>
    %96 = arith.subf %92, %95 : vector<8x8xf32>
    %97 = math.exp %96 : vector<8x8xf32>
    %cst_38 = arith.constant dense<0.000000e+00> : vector<8xf32>
    %98 = vector.multi_reduction <add>, %97, %cst_38 [1] : vector<8x8xf32> to vector<8xf32>
    %99 = vector.shape_cast %98 : vector<8xf32> to vector<8x1xf32>
    %100 = tpu.reciprocal %99 {approx = true} : vector<8x1xf32> -> vector<8x1xf32>
    %101 = vector.broadcast %100 : vector<8x1xf32> to vector<8x8xf32>
    %102 = arith.mulf %97, %101 : vector<8x8xf32>
    %cst_39 = arith.constant dense<0.000000e+00> : vector<8x32xf32>
    %103 = tpu.matmul %102, %87, %cst_39 {dimension_numbers = #tpu.dot_dimension_numbers<[1], [0], [0], [1], [0, 0, 1, 1], [], []>} : vector<8x8xf32>, vector<8x32xf32>, vector<8x32xf32> -> vector<8x32xf32>
    %104 = vector.extract_strided_slice %42 {offsets = [0, 96], sizes = [8, 32], strides = [1, 1]} : vector<16x128xf32> to vector<8x32xf32>
    %105 = vector.extract_strided_slice %43 {offsets = [0, 96], sizes = [8, 32], strides = [1, 1]} : vector<16x128xf32> to vector<8x32xf32>
    %106 = vector.extract_strided_slice %44 {offsets = [0, 96], sizes = [8, 32], strides = [1, 1]} : vector<16x128xf32> to vector<8x32xf32>
    %cst_40 = arith.constant dense<0.000000e+00> : vector<8x8xf32>
    %107 = tpu.matmul %104, %105, %cst_40 {dimension_numbers = #tpu.dot_dimension_numbers<[1], [1], [0], [0], [0, 0, 1, 0], [], []>} : vector<8x32xf32>, vector<8x32xf32>, vector<8x8xf32> -> vector<8x8xf32>
    %cst_41 = arith.constant 0.176776692 : f32
    %108 = vector.broadcast %cst_41 : f32 to vector<8x8xf32>
    %109 = arith.mulf %107, %108 : vector<8x8xf32>
    %110 = vector.broadcast %46 : vector<1x8xf32> to vector<8x8xf32>
    %111 = arith.addf %109, %110 : vector<8x8xf32>
    %cst_42 = arith.constant dense<0xFF800000> : vector<8xf32>
    %112 = vector.multi_reduction <maximumf>, %111, %cst_42 [1] : vector<8x8xf32> to vector<8xf32>
    %113 = vector.shape_cast %112 : vector<8xf32> to vector<8x1xf32>
    %114 = vector.broadcast %113 : vector<8x1xf32> to vector<8x8xf32>
    %115 = arith.subf %111, %114 : vector<8x8xf32>
    %116 = math.exp %115 : vector<8x8xf32>
    %cst_43 = arith.constant dense<0.000000e+00> : vector<8xf32>
    %117 = vector.multi_reduction <add>, %116, %cst_43 [1] : vector<8x8xf32> to vector<8xf32>
    %118 = vector.shape_cast %117 : vector<8xf32> to vector<8x1xf32>
    %119 = tpu.reciprocal %118 {approx = true} : vector<8x1xf32> -> vector<8x1xf32>
    %120 = vector.broadcast %119 : vector<8x1xf32> to vector<8x8xf32>
    %121 = arith.mulf %116, %120 : vector<8x8xf32>
    %cst_44 = arith.constant dense<0.000000e+00> : vector<8x32xf32>
    %122 = tpu.matmul %121, %106, %cst_44 {dimension_numbers = #tpu.dot_dimension_numbers<[1], [0], [0], [1], [0, 0, 1, 1], [], []>} : vector<8x8xf32>, vector<8x32xf32>, vector<8x32xf32> -> vector<8x32xf32>
    %123 = tpu.concatenate %65, %84, %103, %122 in 1 : vector<8x32xf32>, vector<8x32xf32>, vector<8x32xf32>, vector<8x32xf32> -> vector<8x128xf32>
    %124 = vector.extract_strided_slice %9 {offsets = [1, 0, 0], sizes = [1, 1, 8], strides = [1, 1, 1]} : vector<2x1x8xf32> to vector<1x1x8xf32>
    %125 = vector.shape_cast %124 : vector<1x1x8xf32> to vector<1x8xf32>
    %126 = vector.extract_strided_slice %42 {offsets = [8, 0], sizes = [8, 32], strides = [1, 1]} : vector<16x128xf32> to vector<8x32xf32>
    %127 = vector.extract_strided_slice %43 {offsets = [8, 0], sizes = [8, 32], strides = [1, 1]} : vector<16x128xf32> to vector<8x32xf32>
    %128 = vector.extract_strided_slice %44 {offsets = [8, 0], sizes = [8, 32], strides = [1, 1]} : vector<16x128xf32> to vector<8x32xf32>
    %cst_45 = arith.constant dense<0.000000e+00> : vector<8x8xf32>
    %129 = tpu.matmul %126, %127, %cst_45 {dimension_numbers = #tpu.dot_dimension_numbers<[1], [1], [0], [0], [0, 0, 1, 0], [], []>} : vector<8x32xf32>, vector<8x32xf32>, vector<8x8xf32> -> vector<8x8xf32>
    %cst_46 = arith.constant 0.176776692 : f32
    %130 = vector.broadcast %cst_46 : f32 to vector<8x8xf32>
    %131 = arith.mulf %129, %130 : vector<8x8xf32>
    %132 = vector.broadcast %125 : vector<1x8xf32> to vector<8x8xf32>
    %133 = arith.addf %131, %132 : vector<8x8xf32>
    %cst_47 = arith.constant dense<0xFF800000> : vector<8xf32>
    %134 = vector.multi_reduction <maximumf>, %133, %cst_47 [1] : vector<8x8xf32> to vector<8xf32>
    %135 = vector.shape_cast %134 : vector<8xf32> to vector<8x1xf32>
    %136 = vector.broadcast %135 : vector<8x1xf32> to vector<8x8xf32>
    %137 = arith.subf %133, %136 : vector<8x8xf32>
    %138 = math.exp %137 : vector<8x8xf32>
    %cst_48 = arith.constant dense<0.000000e+00> : vector<8xf32>
    %139 = vector.multi_reduction <add>, %138, %cst_48 [1] : vector<8x8xf32> to vector<8xf32>
    %140 = vector.shape_cast %139 : vector<8xf32> to vector<8x1xf32>
    %141 = tpu.reciprocal %140 {approx = true} : vector<8x1xf32> -> vector<8x1xf32>
    %142 = vector.broadcast %141 : vector<8x1xf32> to vector<8x8xf32>
    %143 = arith.mulf %138, %142 : vector<8x8xf32>
    %cst_49 = arith.constant dense<0.000000e+00> : vector<8x32xf32>
    %144 = tpu.matmul %143, %128, %cst_49 {dimension_numbers = #tpu.dot_dimension_numbers<[1], [0], [0], [1], [0, 0, 1, 1], [], []>} : vector<8x8xf32>, vector<8x32xf32>, vector<8x32xf32> -> vector<8x32xf32>
    %145 = vector.extract_strided_slice %42 {offsets = [8, 32], sizes = [8, 32], strides = [1, 1]} : vector<16x128xf32> to vector<8x32xf32>
    %146 = vector.extract_strided_slice %43 {offsets = [8, 32], sizes = [8, 32], strides = [1, 1]} : vector<16x128xf32> to vector<8x32xf32>
    %147 = vector.extract_strided_slice %44 {offsets = [8, 32], sizes = [8, 32], strides = [1, 1]} : vector<16x128xf32> to vector<8x32xf32>
    %cst_50 = arith.constant dense<0.000000e+00> : vector<8x8xf32>
    %148 = tpu.matmul %145, %146, %cst_50 {dimension_numbers = #tpu.dot_dimension_numbers<[1], [1], [0], [0], [0, 0, 1, 0], [], []>} : vector<8x32xf32>, vector<8x32xf32>, vector<8x8xf32> -> vector<8x8xf32>
    %cst_51 = arith.constant 0.176776692 : f32
    %149 = vector.broadcast %cst_51 : f32 to vector<8x8xf32>
    %150 = arith.mulf %148, %149 : vector<8x8xf32>
    %151 = vector.broadcast %125 : vector<1x8xf32> to vector<8x8xf32>
    %152 = arith.addf %150, %151 : vector<8x8xf32>
    %cst_52 = arith.constant dense<0xFF800000> : vector<8xf32>
    %153 = vector.multi_reduction <maximumf>, %152, %cst_52 [1] : vector<8x8xf32> to vector<8xf32>
    %154 = vector.shape_cast %153 : vector<8xf32> to vector<8x1xf32>
    %155 = vector.broadcast %154 : vector<8x1xf32> to vector<8x8xf32>
    %156 = arith.subf %152, %155 : vector<8x8xf32>
    %157 = math.exp %156 : vector<8x8xf32>
    %cst_53 = arith.constant dense<0.000000e+00> : vector<8xf32>
    %158 = vector.multi_reduction <add>, %157, %cst_53 [1] : vector<8x8xf32> to vector<8xf32>
    %159 = vector.shape_cast %158 : vector<8xf32> to vector<8x1xf32>
    %160 = tpu.reciprocal %159 {approx = true} : vector<8x1xf32> -> vector<8x1xf32>
    %161 = vector.broadcast %160 : vector<8x1xf32> to vector<8x8xf32>
    %162 = arith.mulf %157, %161 : vector<8x8xf32>
    %cst_54 = arith.constant dense<0.000000e+00> : vector<8x32xf32>
    %163 = tpu.matmul %162, %147, %cst_54 {dimension_numbers = #tpu.dot_dimension_numbers<[1], [0], [0], [1], [0, 0, 1, 1], [], []>} : vector<8x8xf32>, vector<8x32xf32>, vector<8x32xf32> -> vector<8x32xf32>
    %164 = vector.extract_strided_slice %42 {offsets = [8, 64], sizes = [8, 32], strides = [1, 1]} : vector<16x128xf32> to vector<8x32xf32>
    %165 = vector.extract_strided_slice %43 {offsets = [8, 64], sizes = [8, 32], strides = [1, 1]} : vector<16x128xf32> to vector<8x32xf32>
    %166 = vector.extract_strided_slice %44 {offsets = [8, 64], sizes = [8, 32], strides = [1, 1]} : vector<16x128xf32> to vector<8x32xf32>
    %cst_55 = arith.constant dense<0.000000e+00> : vector<8x8xf32>
    %167 = tpu.matmul %164, %165, %cst_55 {dimension_numbers = #tpu.dot_dimension_numbers<[1], [1], [0], [0], [0, 0, 1, 0], [], []>} : vector<8x32xf32>, vector<8x32xf32>, vector<8x8xf32> -> vector<8x8xf32>
    %cst_56 = arith.constant 0.176776692 : f32
    %168 = vector.broadcast %cst_56 : f32 to vector<8x8xf32>
    %169 = arith.mulf %167, %168 : vector<8x8xf32>
    %170 = vector.broadcast %125 : vector<1x8xf32> to vector<8x8xf32>
    %171 = arith.addf %169, %170 : vector<8x8xf32>
    %cst_57 = arith.constant dense<0xFF800000> : vector<8xf32>
    %172 = vector.multi_reduction <maximumf>, %171, %cst_57 [1] : vector<8x8xf32> to vector<8xf32>
    %173 = vector.shape_cast %172 : vector<8xf32> to vector<8x1xf32>
    %174 = vector.broadcast %173 : vector<8x1xf32> to vector<8x8xf32>
    %175 = arith.subf %171, %174 : vector<8x8xf32>
    %176 = math.exp %175 : vector<8x8xf32>
    %cst_58 = arith.constant dense<0.000000e+00> : vector<8xf32>
    %177 = vector.multi_reduction <add>, %176, %cst_58 [1] : vector<8x8xf32> to vector<8xf32>
    %178 = vector.shape_cast %177 : vector<8xf32> to vector<8x1xf32>
    %179 = tpu.reciprocal %178 {approx = true} : vector<8x1xf32> -> vector<8x1xf32>
    %180 = vector.broadcast %179 : vector<8x1xf32> to vector<8x8xf32>
    %181 = arith.mulf %176, %180 : vector<8x8xf32>
    %cst_59 = arith.constant dense<0.000000e+00> : vector<8x32xf32>
    %182 = tpu.matmul %181, %166, %cst_59 {dimension_numbers = #tpu.dot_dimension_numbers<[1], [0], [0], [1], [0, 0, 1, 1], [], []>} : vector<8x8xf32>, vector<8x32xf32>, vector<8x32xf32> -> vector<8x32xf32>
    %183 = vector.extract_strided_slice %42 {offsets = [8, 96], sizes = [8, 32], strides = [1, 1]} : vector<16x128xf32> to vector<8x32xf32>
    %184 = vector.extract_strided_slice %43 {offsets = [8, 96], sizes = [8, 32], strides = [1, 1]} : vector<16x128xf32> to vector<8x32xf32>
    %185 = vector.extract_strided_slice %44 {offsets = [8, 96], sizes = [8, 32], strides = [1, 1]} : vector<16x128xf32> to vector<8x32xf32>
    %cst_60 = arith.constant dense<0.000000e+00> : vector<8x8xf32>
    %186 = tpu.matmul %183, %184, %cst_60 {dimension_numbers = #tpu.dot_dimension_numbers<[1], [1], [0], [0], [0, 0, 1, 0], [], []>} : vector<8x32xf32>, vector<8x32xf32>, vector<8x8xf32> -> vector<8x8xf32>
    %cst_61 = arith.constant 0.176776692 : f32
    %187 = vector.broadcast %cst_61 : f32 to vector<8x8xf32>
    %188 = arith.mulf %186, %187 : vector<8x8xf32>
    %189 = vector.broadcast %125 : vector<1x8xf32> to vector<8x8xf32>
    %190 = arith.addf %188, %189 : vector<8x8xf32>
    %cst_62 = arith.constant dense<0xFF800000> : vector<8xf32>
    %191 = vector.multi_reduction <maximumf>, %190, %cst_62 [1] : vector<8x8xf32> to vector<8xf32>
    %192 = vector.shape_cast %191 : vector<8xf32> to vector<8x1xf32>
    %193 = vector.broadcast %192 : vector<8x1xf32> to vector<8x8xf32>
    %194 = arith.subf %190, %193 : vector<8x8xf32>
    %195 = math.exp %194 : vector<8x8xf32>
    %cst_63 = arith.constant dense<0.000000e+00> : vector<8xf32>
    %196 = vector.multi_reduction <add>, %195, %cst_63 [1] : vector<8x8xf32> to vector<8xf32>
    %197 = vector.shape_cast %196 : vector<8xf32> to vector<8x1xf32>
    %198 = tpu.reciprocal %197 {approx = true} : vector<8x1xf32> -> vector<8x1xf32>
    %199 = vector.broadcast %198 : vector<8x1xf32> to vector<8x8xf32>
    %200 = arith.mulf %195, %199 : vector<8x8xf32>
    %cst_64 = arith.constant dense<0.000000e+00> : vector<8x32xf32>
    %201 = tpu.matmul %200, %185, %cst_64 {dimension_numbers = #tpu.dot_dimension_numbers<[1], [0], [0], [1], [0, 0, 1, 1], [], []>} : vector<8x8xf32>, vector<8x32xf32>, vector<8x32xf32> -> vector<8x32xf32>
    %202 = tpu.concatenate %144, %163, %182, %201 in 1 : vector<8x32xf32>, vector<8x32xf32>, vector<8x32xf32>, vector<8x32xf32> -> vector<8x128xf32>
    %203 = tpu.concatenate %123, %202 in 0 : vector<8x128xf32>, vector<8x128xf32> -> vector<16x128xf32>
    %c0_65 = arith.constant 0 : index
    %c0_66 = arith.constant 0 : index
    %c0_67 = arith.constant 0 : index
    %204 = vector.load %arg6[%c0_65, %c0_66, %c0_67] : memref<1x128x128xf32, #tpu.memory_space<vmem>>, vector<1x128x128xf32>
    %205 = vector.shape_cast %204 : vector<1x128x128xf32> to vector<128x128xf32>
    %cst_68 = arith.constant dense<0.000000e+00> : vector<16x128xf32>
    %206 = tpu.matmul %203, %205, %cst_68 {dimension_numbers = #tpu.dot_dimension_numbers<[1], [0], [0], [1], [0, 0, 1, 1], [], []>} : vector<16x128xf32>, vector<128x128xf32>, vector<16x128xf32> -> vector<16x128xf32>
    %c0_69 = arith.constant 0 : index
    %c0_70 = arith.constant 0 : index
    %c0_71 = arith.constant 0 : index
    %207 = vector.load %arg7[%c0_69, %c0_70, %c0_71] : memref<1x1x128xf32, #tpu.memory_space<vmem>>, vector<1x1x128xf32>
    %208 = vector.shape_cast %207 : vector<1x1x128xf32> to vector<1x128xf32>
    %209 = vector.broadcast %208 : vector<1x128xf32> to vector<16x128xf32>
    %210 = arith.addf %206, %209 : vector<16x128xf32>
    %211 = arith.addf %3, %210 : vector<16x128xf32>
    %c0_72 = arith.constant 0 : index
    %c0_73 = arith.constant 0 : index
    %c0_74 = arith.constant 0 : index
    %212 = vector.load %arg14[%c0_72, %c0_73, %c0_74] : memref<1x1x128xf32, #tpu.memory_space<vmem>>, vector<1x1x128xf32>
    %213 = vector.shape_cast %212 : vector<1x1x128xf32> to vector<1x128xf32>
    %c0_75 = arith.constant 0 : index
    %c0_76 = arith.constant 0 : index
    %c0_77 = arith.constant 0 : index
    %214 = vector.load %arg15[%c0_75, %c0_76, %c0_77] : memref<1x1x128xf32, #tpu.memory_space<vmem>>, vector<1x1x128xf32>
    %215 = vector.shape_cast %214 : vector<1x1x128xf32> to vector<1x128xf32>
    %cst_78 = arith.constant dense<0.000000e+00> : vector<16xf32>
    %216 = vector.multi_reduction <add>, %211, %cst_78 [1] : vector<16x128xf32> to vector<16xf32>
    %217 = vector.shape_cast %216 : vector<16xf32> to vector<16x1xf32>
    %cst_79 = arith.constant 1.280000e+02 : f32
    %218 = vector.broadcast %cst_79 : f32 to vector<16x1xf32>
    %219 = arith.divf %217, %218 : vector<16x1xf32>
    %220 = vector.broadcast %219 : vector<16x1xf32> to vector<16x128xf32>
    %221 = arith.subf %211, %220 : vector<16x128xf32>
    %222 = arith.mulf %221, %221 : vector<16x128xf32>
    %cst_80 = arith.constant dense<0.000000e+00> : vector<16xf32>
    %223 = vector.multi_reduction <add>, %222, %cst_80 [1] : vector<16x128xf32> to vector<16xf32>
    %224 = vector.shape_cast %223 : vector<16xf32> to vector<16x1xf32>
    %cst_81 = arith.constant 1.270000e+02 : f32
    %225 = vector.broadcast %cst_81 : f32 to vector<16x1xf32>
    %226 = arith.divf %224, %225 : vector<16x1xf32>
    %227 = math.sqrt %226 : vector<16x1xf32>
    %cst_82 = arith.constant 9.99999997E-7 : f32
    %228 = vector.broadcast %cst_82 : f32 to vector<16x1xf32>
    %229 = arith.addf %227, %228 : vector<16x1xf32>
    %230 = tpu.reciprocal %229 {approx = true} : vector<16x1xf32> -> vector<16x1xf32>
    %231 = vector.broadcast %213 : vector<1x128xf32> to vector<16x128xf32>
    %232 = arith.mulf %231, %221 : vector<16x128xf32>
    %233 = vector.broadcast %230 : vector<16x1xf32> to vector<16x128xf32>
    %234 = arith.mulf %232, %233 : vector<16x128xf32>
    %235 = vector.broadcast %215 : vector<1x128xf32> to vector<16x128xf32>
    %236 = arith.addf %234, %235 : vector<16x128xf32>
    %c0_83 = arith.constant 0 : index
    %c0_84 = arith.constant 0 : index
    %c0_85 = arith.constant 0 : index
    %237 = vector.load %arg8[%c0_83, %c0_84, %c0_85] : memref<1x128x256xf32, #tpu.memory_space<vmem>>, vector<1x128x256xf32>
    %238 = vector.shape_cast %237 : vector<1x128x256xf32> to vector<128x256xf32>
    %cst_86 = arith.constant dense<0.000000e+00> : vector<16x256xf32>
    %239 = tpu.matmul %236, %238, %cst_86 {dimension_numbers = #tpu.dot_dimension_numbers<[1], [0], [0], [1], [0, 0, 1, 1], [], []>} : vector<16x128xf32>, vector<128x256xf32>, vector<16x256xf32> -> vector<16x256xf32>
    %c0_87 = arith.constant 0 : index
    %c0_88 = arith.constant 0 : index
    %c0_89 = arith.constant 0 : index
    %240 = vector.load %arg9[%c0_87, %c0_88, %c0_89] : memref<1x1x256xf32, #tpu.memory_space<vmem>>, vector<1x1x256xf32>
    %241 = vector.shape_cast %240 : vector<1x1x256xf32> to vector<1x256xf32>
    %242 = vector.broadcast %241 : vector<1x256xf32> to vector<16x256xf32>
    %243 = arith.addf %239, %242 : vector<16x256xf32>
    %cst_90 = arith.constant 0.000000e+00 : f32
    %244 = vector.broadcast %cst_90 : f32 to vector<16x256xf32>
    %245 = arith.maximumf %243, %244 : vector<16x256xf32>
    %c0_91 = arith.constant 0 : index
    %c0_92 = arith.constant 0 : index
    %c0_93 = arith.constant 0 : index
    %246 = vector.load %arg10[%c0_91, %c0_92, %c0_93] : memref<1x256x128xf32, #tpu.memory_space<vmem>>, vector<1x256x128xf32>
    %247 = vector.shape_cast %246 : vector<1x256x128xf32> to vector<256x128xf32>
    %cst_94 = arith.constant dense<0.000000e+00> : vector<16x128xf32>
    %248 = tpu.matmul %245, %247, %cst_94 {dimension_numbers = #tpu.dot_dimension_numbers<[1], [0], [0], [1], [0, 0, 1, 1], [], []>} : vector<16x256xf32>, vector<256x128xf32>, vector<16x128xf32> -> vector<16x128xf32>
    %c0_95 = arith.constant 0 : index
    %c0_96 = arith.constant 0 : index
    %c0_97 = arith.constant 0 : index
    %249 = vector.load %arg11[%c0_95, %c0_96, %c0_97] : memref<1x1x128xf32, #tpu.memory_space<vmem>>, vector<1x1x128xf32>
    %250 = vector.shape_cast %249 : vector<1x1x128xf32> to vector<1x128xf32>
    %251 = vector.broadcast %250 : vector<1x128xf32> to vector<16x128xf32>
    %252 = arith.addf %248, %251 : vector<16x128xf32>
    %253 = arith.addf %211, %252 : vector<16x128xf32>
    %c0_98 = arith.constant 0 : index
    %c0_99 = arith.constant 0 : index
    %254 = vector.load %arg19[%c0_98, %c0_99] : memref<16x128xf32, #tpu.memory_space<vmem>>, vector<16x128xf32>
    tpu.vector_store %arg19[%c0_98, %c0_99], %253 {strides = array<i32>} : memref<16x128xf32, #tpu.memory_space<vmem>>, vector<16x128xf32>,
    %c1_i32 = arith.constant 1 : i32
    %255 = arith.cmpi eq, %arg1, %c1_i32 : i32
    %256 = arith.extui %255 : i1 to i32
    %c0_i32_100 = arith.constant 0 : i32
    %257 = arith.cmpi ne, %256, %c0_i32_100 : i32
    scf.if %257 {
      %c0_101 = arith.constant 0 : index
      %c0_102 = arith.constant 0 : index
      %258 = vector.load %arg16[%c0_101, %c0_102] : memref<1x128xf32, #tpu.memory_space<vmem>>, vector<1x128xf32>
      %c0_103 = arith.constant 0 : index
      %c0_104 = arith.constant 0 : index
      %259 = vector.load %arg17[%c0_103, %c0_104] : memref<1x128xf32, #tpu.memory_space<vmem>>, vector<1x128xf32>
      %cst_105 = arith.constant dense<0.000000e+00> : vector<16xf32>
      %260 = vector.multi_reduction <add>, %253, %cst_105 [1] : vector<16x128xf32> to vector<16xf32>
      %261 = vector.shape_cast %260 : vector<16xf32> to vector<16x1xf32>
      %cst_106 = arith.constant 1.280000e+02 : f32
      %262 = vector.broadcast %cst_106 : f32 to vector<16x1xf32>
      %263 = arith.divf %261, %262 : vector<16x1xf32>
      %264 = vector.broadcast %263 : vector<16x1xf32> to vector<16x128xf32>
      %265 = arith.subf %253, %264 : vector<16x128xf32>
      %266 = arith.mulf %265, %265 : vector<16x128xf32>
      %cst_107 = arith.constant dense<0.000000e+00> : vector<16xf32>
      %267 = vector.multi_reduction <add>, %266, %cst_107 [1] : vector<16x128xf32> to vector<16xf32>
      %268 = vector.shape_cast %267 : vector<16xf32> to vector<16x1xf32>
      %cst_108 = arith.constant 1.270000e+02 : f32
      %269 = vector.broadcast %cst_108 : f32 to vector<16x1xf32>
      %270 = arith.divf %268, %269 : vector<16x1xf32>
      %271 = math.sqrt %270 : vector<16x1xf32>
      %cst_109 = arith.constant 9.99999997E-7 : f32
      %272 = vector.broadcast %cst_109 : f32 to vector<16x1xf32>
      %273 = arith.addf %271, %272 : vector<16x1xf32>
      %274 = tpu.reciprocal %273 {approx = true} : vector<16x1xf32> -> vector<16x1xf32>
      %275 = vector.broadcast %258 : vector<1x128xf32> to vector<16x128xf32>
      %276 = arith.mulf %275, %265 : vector<16x128xf32>
      %277 = vector.broadcast %274 : vector<16x1xf32> to vector<16x128xf32>
      %278 = arith.mulf %276, %277 : vector<16x128xf32>
      %279 = vector.broadcast %259 : vector<1x128xf32> to vector<16x128xf32>
      %280 = arith.addf %278, %279 : vector<16x128xf32>
      %c0_110 = arith.constant 0 : index
      %c0_111 = arith.constant 0 : index
      %281 = vector.load %arg18[%c0_110, %c0_111] : memref<16x128xf32, #tpu.memory_space<vmem>>, vector<16x128xf32>
      tpu.vector_store %arg18[%c0_110, %c0_111], %280 {strides = array<i32>} : memref<16x128xf32, #tpu.memory_space<vmem>>, vector<16x128xf32>,
    } else {
    }
    return
  }
  func.func @transform_0(%arg0: i32, %arg1: i32) -> (i32, i32) {
    %c0_i32 = arith.constant 0 : i32
    %c0_i32_0 = arith.constant 0 : i32
    return %arg0, %c0_i32 : i32, i32
  }
  func.func @transform_1(%arg0: i32, %arg1: i32) -> (i32, i32, i32) {
    %c0_i32 = arith.constant 0 : i32
    %c0_i32_0 = arith.constant 0 : i32
    %c0_i32_1 = arith.constant 0 : i32
    return %arg0, %c0_i32, %c0_i32_0 : i32, i32, i32
  }
  func.func @transform_2(%arg0: i32, %arg1: i32) -> (i32, i32, i32) {
    %c0_i32 = arith.constant 0 : i32
    %c0_i32_0 = arith.constant 0 : i32
    %c0_i32_1 = arith.constant 0 : i32
    return %arg1, %c0_i32, %c0_i32_0 : i32, i32, i32
  }
  func.func @transform_3(%arg0: i32, %arg1: i32) -> (i32, i32, i32) {
    %c0_i32 = arith.constant 0 : i32
    %c0_i32_0 = arith.constant 0 : i32
    %c0_i32_1 = arith.constant 0 : i32
    return %arg1, %c0_i32, %c0_i32_0 : i32, i32, i32
  }
  func.func @transform_4(%arg0: i32, %arg1: i32) -> (i32, i32, i32) {
    %c0_i32 = arith.constant 0 : i32
    %c0_i32_0 = arith.constant 0 : i32
    %c0_i32_1 = arith.constant 0 : i32
    return %arg1, %c0_i32, %c0_i32_0 : i32, i32, i32
  }
  func.func @transform_5(%arg0: i32, %arg1: i32) -> (i32, i32, i32) {
    %c0_i32 = arith.constant 0 : i32
    %c0_i32_0 = arith.constant 0 : i32
    %c0_i32_1 = arith.constant 0 : i32
    return %arg1, %c0_i32, %c0_i32_0 : i32, i32, i32
  }
  func.func @transform_6(%arg0: i32, %arg1: i32) -> (i32, i32, i32) {
    %c0_i32 = arith.constant 0 : i32
    %c0_i32_0 = arith.constant 0 : i32
    %c0_i32_1 = arith.constant 0 : i32
    return %arg1, %c0_i32, %c0_i32_0 : i32, i32, i32
  }
  func.func @transform_7(%arg0: i32, %arg1: i32) -> (i32, i32, i32) {
    %c0_i32 = arith.constant 0 : i32
    %c0_i32_0 = arith.constant 0 : i32
    %c0_i32_1 = arith.constant 0 : i32
    return %arg1, %c0_i32, %c0_i32_0 : i32, i32, i32
  }
  func.func @transform_8(%arg0: i32, %arg1: i32) -> (i32, i32, i32) {
    %c0_i32 = arith.constant 0 : i32
    %c0_i32_0 = arith.constant 0 : i32
    %c0_i32_1 = arith.constant 0 : i32
    return %arg1, %c0_i32, %c0_i32_0 : i32, i32, i32
  }
  func.func @transform_9(%arg0: i32, %arg1: i32) -> (i32, i32, i32) {
    %c0_i32 = arith.constant 0 : i32
    %c0_i32_0 = arith.constant 0 : i32
    %c0_i32_1 = arith.constant 0 : i32
    return %arg1, %c0_i32, %c0_i32_0 : i32, i32, i32
  }
  func.func @transform_10(%arg0: i32, %arg1: i32) -> (i32, i32, i32) {
    %c0_i32 = arith.constant 0 : i32
    %c0_i32_0 = arith.constant 0 : i32
    %c0_i32_1 = arith.constant 0 : i32
    return %arg1, %c0_i32, %c0_i32_0 : i32, i32, i32
  }
  func.func @transform_11(%arg0: i32, %arg1: i32) -> (i32, i32, i32) {
    %c0_i32 = arith.constant 0 : i32
    %c0_i32_0 = arith.constant 0 : i32
    %c0_i32_1 = arith.constant 0 : i32
    return %arg1, %c0_i32, %c0_i32_0 : i32, i32, i32
  }
  func.func @transform_12(%arg0: i32, %arg1: i32) -> (i32, i32, i32) {
    %c0_i32 = arith.constant 0 : i32
    %c0_i32_0 = arith.constant 0 : i32
    %c0_i32_1 = arith.constant 0 : i32
    return %arg1, %c0_i32, %c0_i32_0 : i32, i32, i32
  }
  func.func @transform_13(%arg0: i32, %arg1: i32) -> (i32, i32, i32) {
    %c0_i32 = arith.constant 0 : i32
    %c0_i32_0 = arith.constant 0 : i32
    %c0_i32_1 = arith.constant 0 : i32
    return %arg1, %c0_i32, %c0_i32_0 : i32, i32, i32
  }
  func.func @transform_14(%arg0: i32, %arg1: i32) -> (i32, i32) {
    %c0_i32 = arith.constant 0 : i32
    %c0_i32_0 = arith.constant 0 : i32
    %c0_i32_1 = arith.constant 0 : i32
    return %c0_i32, %c0_i32_0 : i32, i32
  }
  func.func @transform_15(%arg0: i32, %arg1: i32) -> (i32, i32) {
    %c0_i32 = arith.constant 0 : i32
    %c0_i32_0 = arith.constant 0 : i32
    %c0_i32_1 = arith.constant 0 : i32
    return %c0_i32, %c0_i32_0 : i32, i32
  }
  func.func @transform_16(%arg0: i32, %arg1: i32) -> (i32, i32) {
    %c0_i32 = arith.constant 0 : i32
    %c0_i32_0 = arith.constant 0 : i32
    return %arg0, %c0_i32 : i32, i32
  }
}

</mosaic_0001>

<bundles_post_ra>
// kernel: tpu_custom_call.1
= control target key start
LH: loop header
LB: loop body
LE: loop exit
PB: predicated region body
PF: predicated region fallthrough
CT: control target
= control target key end

     0   :  { %s4734_s0 = inlined_call_operand.hbm [shape: f32[16,128], index: 0, kind: input, shape index: {}]   ;;  %s4735_s1 = inlined_call_operand.hbm [shape: f32[2,1,8], index: 1, kind: input, shape index: {}]   ;;  %s4736_s2 = inlined_call_operand.hbm [shape: f32[2,128,384], index: 2, kind: input, shape index: {}]   ;;  %s4737_s3 = inlined_call_operand.hbm [shape: f32[2,1,384], index: 3, kind: input, shape index: {}]   ;;  %s4738_s4 = inlined_call_operand.hbm [shape: f32[2,128,128], index: 4, kind: input, shape index: {}]   ;;  %s4739_s5 = inlined_call_operand.vmem [shape: f32[2,1,128], index: 5, kind: input, shape index: {}]   ;;  %s4740_s6 = inlined_call_operand.hbm [shape: f32[2,128,256], index: 6, kind: input, shape index: {}]   ;;  %s4741_s7 = inlined_call_operand.vmem [shape: f32[2,1,256], index: 7, kind: input, shape index: {}]   ;;  %s4742_s8 = inlined_call_operand.hbm [shape: f32[2,256,128], index: 8, kind: input, shape index: {}]   ;;  %s4743_s9 = inlined_call_operand.vmem [shape: f32[2,1,128], index: 9, kind: input, shape index: {}]   ;;  %s4744_s10 = inlined_call_operand.vmem [shape: f32[2,1,128], index: 10, kind: input, shape index: {}]   ;;  %s4745_s11 = inlined_call_operand.vmem [shape: f32[2,1,128], index: 11, kind: input, shape index: {}]   ;;  %s4746_s12 = inlined_call_operand.vmem [shape: f32[2,1,128], index: 12, kind: input, shape index: {}]   ;;  %s4747_s13 = inlined_call_operand.vmem [shape: f32[2,1,128], index: 13, kind: input, shape index: {}]   ;;  %s4748_s14 = inlined_call_operand.vmem [shape: f32[1,128], index: 14, kind: input, shape index: {}]   ;;  %s4749_s15 = inlined_call_operand.vmem [shape: f32[1,128], index: 15, kind: input, shape index: {}]   ;;  %s4750_s16 = inlined_call_operand.hbm [shape: f32[16,128], index: 16, kind: output, shape index: {}]  }
   0x1   :  { %4761 = sst [smem:[#allocation23_spill]] %s4734_s0 }
   0x2   :  { %4762 = sst [smem:[#allocation24_spill]] %s4735_s1 }
   0x3   :  { %4763 = sst [smem:[#allocation25_spill]] %s4736_s2 }
   0x4   :  { %4764 = sst [smem:[#allocation26_spill]] %s4737_s3 }
   0x5   :  { %4765 = sst [smem:[#allocation27_spill]] %s4738_s4 }
   0x6   :  { %4766 = sst [smem:[#allocation28_spill]] %s4739_s5 }
   0x7   :  { %4767 = sst [smem:[#allocation29_spill]] %s4740_s6 }
   0x8   :  { %4768 = sst [smem:[#allocation30_spill]] %s4741_s7 }
   0x9   :  { %4769 = sst [smem:[#allocation31_spill]] %s4742_s8 }
   0xa   :  { %4770 = sst [smem:[#allocation32_spill]] %s4743_s9 }
   0xb   :  { %4771 = sst [smem:[#allocation33_spill]] %s4744_s10 }
   0xc   :  { %4772 = sst [smem:[#allocation34_spill]] %s4745_s11 }
   0xd   :  { %4773 = sst [smem:[#allocation35_spill]] %s4746_s12 }
   0xe   :  { %4774 = sst [smem:[#allocation36_spill]] %s4747_s13 }
   0xf   :  { %4775 = sst [smem:[#allocation37_spill]] %s4748_s14 }
  0x10   :  { %4776 = sst [smem:[#allocation38_spill]] %s4749_s15 }
  0x11   :  { %4777 = sst [smem:[#allocation39_spill]] %s4750_s16 }
  0x12   :  { %21 = vsyncpa [#allocation4], 0 }
  0x13   :  { %22 = vsyncpa [#allocation7], 0 }
  0x14   :  { %23 = vsyncpa [#allocation5], 0  ;;  %s4103_s21 = smov 0   ;;  %s4105_s22 = smov 0  }
  0x15   :  { %s4107_s23 = smov 0   ;;  %s4109_s24 = smov 0  }
  0x16   :  { %s4111_s25 = smov 0   ;;  %s4113_s26 = smov 0  }
  0x17 LB: > { %4778 = sst [smem:[#allocation18_spill]] %s3982_s23  ;;  %s4132_s27 = sadd.s32 4294967295, %s3994_s26   ;;  %s3994_s26 = sphi %s4113_s26, %s29_s26   ;;  %s3990_s25 = sphi %s4111_s25, %s4829_s25   ;;  %s3986_s24 = sphi %s4109_s24, %s4828_s24   ;;  %s3982_s23 = sphi %s4107_s23, %s4824_s23   ;;  %s3978_s22 = sphi %s4105_s22, %s4827_s22   ;;  %s3974_s21 = sphi %s4103_s21, %s4826_s21  }
  0x18   : > { %4779 = sst [smem:[#allocation19_spill]] %s3986_s24  ;;  %p107_p0 = scmp.ne.s32.totalorder %s3982_s23, %s3978_s22 }
  0x19   : > { %4780 = sst [smem:[#allocation20_spill]] %s3994_s26  ;;  %p108_p1 = scmp.eq.s32.totalorder %s3994_s26, 0 }
  0x1a   : > { %p113_p2 = scmp.ne.s32.totalorder %s3978_s22, %s3974_s21  ;;  %p4751_p3 = scmp.eq.s32.totalorder %s4132_s27, 0 }
  0x1b   : > { %p109_p4 = por %p108_p1, %p107_p0  ;;  %p3201_p5 = scmp.ge.s32.totalorder %s3994_s26, 1 }
  0x1c   : > { %p4143_p6 = por %p4751_p3, %p113_p2  ;;  %p478_p7 = scmp.lt.s32.totalorder %s3994_s26, 3 }
  0x1d   : > { %s3996_s0 = smov [#allocation3]   ;;  %p3573_p10 = scmp.lt.s32.totalorder %s3994_s26, 2 }
  0x1e   : > { %s4781_s29 = scalar_select %p4143_p6, 1, 0 }
  0x1f   : > { %p4148_p8 = pnand %p3201_p5, %p478_p7  ;;  %s493_s17 = sshll.u32 %s3996_s0, 4  ;;  %s494_s17 = int_to_ptr.vmem [resolvable:$true] %s493_s17 }
  0x20   : > { %p4161_p12 = pnand %p3573_p10, %p109_p4  ;;  %s38_s20 = sadd.s32 1, %s3990_s25 }
  0x21   : > { %p3548_p9 = pneg %p4148_p8  ;;  %s3727_s21 = scalar_lea.vmem %s494_s17, 256 }
  0x22   : > { %p3728_p0 = scmp.ne.s32.totalorder %s494_s17, %s3727_s21  ;;  %p3735_p5 = scmp.lt.s32.totalorder %s494_s17, %s494_s17 }
  0x23   : > { %p4157_p11 = pnand %p3548_p9, %p4751_p3  ;;  %p3736_p7 = scmp.lt.s32.totalorder %s3727_s21, %s3727_s21 }
  0x25   : > { %p3718_p13 = pneg %p4157_p11  ;;  %p3737_p9 = por %p3736_p7, %p3735_p5 }
  0x27   : > { %p3730_p1 = pnand %p3728_p0, %p3718_p13 }
  0x29   : > { %p3731_p2 = pneg %p3730_p1 }
  0x2b   : > { %p3738_p3 = pnand %p3737_p9, %p3731_p2 }
  0x2d   : > { %3741 = shalt.err (!%p3738_p3)
}
  0x2e   : > { %s4752_s0 = smov 128   ;;  %s4754_s28 = smov 8  }
  0x2f   : > { %s4785_s14 = sld [smem:[#allocation23_spill]]  ;;  %p39_p4 = scmp.ge.s32.totalorder %s38_s20, 2 }
  0x30   : > { %s529_s21 = sand.u32 1, %s3994_s26   ;;  %s4181_s13 = sand.u32 1, %s3982_s23  }
  0x31   : > { %s4831_s20 = smov (%p39_p4, %s38_s20), 0  ;;  %s3520_s12 = smul.u32 384, %s4181_s13 }
  0x32   : > { %4786 = sst [smem:[#allocation21_spill]] %s4831_s20  ;;  %s97_s11 = ssub.s32 %s3990_s25, %s4831_s20 }
  0x33   : > { %s3521_s10 = smul.u32 6144, %s3990_s25  ;;  %p98_p3 = scmp.eq.s32.totalorder %s97_s11, 0 }
  0x34   : > { %s4787_s2 = sld [smem:[#allocation25_spill]]  ;;  %s533_s15 = scalar_lea.vmem [#allocation8], %s3520_s12 }
  0x35   : > { %3551 = dma.hbm_to_vmem [thread:$0]  (!%p4157_p11), %s4785_s14, 256, %s494_s17, [#allocation4], %s4752_s0, %s4752_s0, %s4754_s28  }
  0x36   : > { %s540_s14 = sshll.u32 %s533_s15, 4  ;;  %s4788_s16 = sadd.s32 1, %s3982_s23  ;;  %s541_s14 = int_to_ptr.vmem [resolvable:$true] %s540_s14 }
  0x37   : > { %s4195_s17 = scalar_select %p98_p3, %s3982_s23, %s4788_s16  }
  0x38   : > { %s3522_s0 = smul.u32 3, %s4181_s13  ;;  %s4198_s28 = scalar_lea.sflag [#allocation4], %s529_s21 }
  0x39   : > { %4789 = sst [smem:[#allocation22_spill]] %s4195_s17  ;;  %p4202_p10 = pneg %p4161_p12 }
  0x3a   : > { %s539_s5 = scalar_lea.hbm %s4787_s2, %s3521_s10  ;;  %s3755_s11 = scalar_lea.vmem %s541_s14, 6144 }
  0x3b   : > { %p3756_p0 = scmp.ne.s32.totalorder %s541_s14, %s3755_s11  ;;  %s3999_s7 = smov [#allocation8]  }
  0x3c   : > { %s3760_s9 = sshll.u32 %s3999_s7, 4  ;;  %s3761_s9 = int_to_ptr.vmem [resolvable:$false] %s3760_s9 }
  0x3d   : > { %p3758_p1 = pnand %p3756_p0, %p4202_p10  ;;  %s3762_s10 = scalar_lea.vmem %s3761_s9, 12288 }
  0x3e   : > { %p3763_p5 = scmp.lt.s32.totalorder %s541_s14, %s3761_s9  ;;  %p3764_p7 = scmp.lt.s32.totalorder %s3762_s10, %s3755_s11 }
  0x3f   : > { %p3759_p2 = pneg %p3758_p1 }
  0x40   : > { %p3765_p9 = por %p3764_p7, %p3763_p5 }
  0x42   : > { %p3766_p4 = pnand %p3765_p9, %p3759_p2 }
  0x44   : > { %3769 = shalt.err (!%p3766_p4)
}
  0x45   : > { %s4000_s12 = smov 384   ;;  %s4001_s21 = smov 24  }
  0x46   : > { %3558 = dma.hbm_to_vmem [thread:$0]  (!%p4161_p12), %s539_s5, 6144, %s541_s14, %s4198_s28, %s4000_s12, %s4000_s12, %s4001_s21  }
  0x47   : > { %s3523_s15 = smul.u32 48, %s3990_s25  ;;  %s554_s16 = scalar_lea.vmem [#allocation9], %s3522_s0 }
  0x48   : > { %s562_s2 = sshll.u32 %s554_s16, 4  ;;  %s3207_s7 = sshll.u32 %s4181_s13, 7  ;;  %s563_s2 = int_to_ptr.vmem [resolvable:$true] %s562_s2 }
  0x49   : > { %s4791_s3 = sld [smem:[#allocation26_spill]]  ;;  %s3783_s9 = scalar_lea.vmem %s563_s2, 48 }
  0x4a   : > { %p3784_p3 = scmp.ne.s32.totalorder %s563_s2, %s3783_s9  ;;  %s4002_s10 = smov [#allocation9]  }
  0x4b   : > { %s3788_s23 = sshll.u32 %s4002_s10, 4  ;;  %s3789_s23 = int_to_ptr.vmem [resolvable:$false] %s3788_s23 }
  0x4c   : > { %p3786_p0 = pnand %p3784_p3, %p4202_p10  ;;  %s3790_s24 = scalar_lea.vmem %s3789_s23, 96 }
  0x4d   : > { %p3791_p2 = scmp.lt.s32.totalorder %s563_s2, %s3789_s23  ;;  %p3792_p5 = scmp.lt.s32.totalorder %s3790_s24, %s3783_s9 }
  0x4e   : > { %p3787_p1 = pneg %p3786_p0 }
  0x4f   : > { %s560_s11 = scalar_lea.hbm %s4791_s3, %s3523_s15  ;;  %p3793_p7 = por %p3792_p5, %p3791_p2 }
  0x51   : > { %p3794_p9 = pnand %p3793_p7, %p3787_p1 }
  0x53   : > { %3797 = shalt.err (!%p3794_p9)
}
  0x54   : > { %3561 = dma.hbm_to_vmem [thread:$0]  (!%p4161_p12), %s560_s11, 48, %s563_s2, %s4198_s28  }
  0x55   : > { %s3261_s5 = sshll.u32 %s3990_s25, 11  ;;  %s4792_s4 = sld [smem:[#allocation27_spill]] }
  0x56   : > { %s573_s17 = scalar_lea.vmem [#allocation10], %s3207_s7  ;;  %s4003_s23 = smov [#allocation10]  }
  0x57   : > { %s580_s12 = sshll.u32 %s573_s17, 4  ;;  %s3816_s24 = sshll.u32 %s4003_s23, 4  ;;  %s581_s12 = int_to_ptr.vmem [resolvable:$true] %s580_s12  ;;  %s3817_s24 = int_to_ptr.vmem [resolvable:$false] %s3816_s24 }
  0x58   : > { %s3811_s21 = scalar_lea.vmem %s581_s12, 2048  ;;  %s3818_s15 = scalar_lea.vmem %s3817_s24, 4096 }
  0x59   : > { %p3812_p4 = scmp.ne.s32.totalorder %s581_s12, %s3811_s21  ;;  %p3819_p1 = scmp.lt.s32.totalorder %s581_s12, %s3817_s24 }
  0x5a   : > { %p3820_p2 = scmp.lt.s32.totalorder %s3818_s15, %s3811_s21 }
  0x5b   : > { %s579_s14 = scalar_lea.hbm %s4792_s4, %s3261_s5  ;;  %p3814_p3 = pnand %p3812_p4, %p4202_p10 }
  0x5c   : > { %p3821_p5 = por %p3820_p2, %p3819_p1 }
  0x5d   : > { %p3815_p0 = pneg %p3814_p3 }
  0x5f   : > { %p3822_p7 = pnand %p3821_p5, %p3815_p0 }
  0x61   : > { %3825 = shalt.err (!%p3822_p7)
}
  0x62   : > { %s4793_s2 = smov 8   ;;  %s4794_s16 = smov 128  }
  0x63   : > { %3564 = dma.hbm_to_vmem [thread:$0]  (!%p4161_p12), %s579_s14, 2048, %s581_s12, %s4198_s28, %s4794_s16, %s4794_s16, %s4793_s2  }
  0x64   : > { %s3210_s7 = sshll.u32 %s4181_s13, 8  ;;  %s3262_s11 = sshll.u32 %s3990_s25, 12 }
  0x65   : > { %s4795_s6 = sld [smem:[#allocation29_spill]]  ;;  %s600_s20 = scalar_lea.vmem [#allocation11], %s3210_s7 }
  0x66   : > { %s607_s0 = sshll.u32 %s600_s20, 4  ;;  %s4004_s21 = smov [#allocation11]   ;;  %s608_s0 = int_to_ptr.vmem [resolvable:$true] %s607_s0 }
  0x67   : > { %s3839_s17 = scalar_lea.vmem %s608_s0, 4096  ;;  %s3844_s23 = sshll.u32 %s4004_s21, 4  ;;  %s3845_s23 = int_to_ptr.vmem [resolvable:$false] %s3844_s23 }
  0x68   : > { %p3840_p9 = scmp.ne.s32.totalorder %s608_s0, %s3839_s17  ;;  %s3846_s14 = scalar_lea.vmem %s3845_s23, 8192 }
  0x69   : > { %p3847_p0 = scmp.lt.s32.totalorder %s608_s0, %s3845_s23  ;;  %p3848_p1 = scmp.lt.s32.totalorder %s3846_s14, %s3839_s17 }
  0x6a   : > { %p3842_p4 = pnand %p3840_p9, %p4202_p10 }
  0x6b   : > { %s606_s5 = scalar_lea.hbm %s4795_s6, %s3262_s11  ;;  %p3849_p2 = por %p3848_p1, %p3847_p0 }
  0x6c   : > { %p3843_p3 = pneg %p3842_p4 }
  0x6e   : > { %p3850_p5 = pnand %p3849_p2, %p3843_p3 }
  0x70   : > { %3853 = shalt.err (!%p3850_p5)
}
  0x71   : > { %s4005_s12 = smov 256   ;;  %s4006_s24 = smov 16  }
  0x72   : > { %3567 = dma.hbm_to_vmem [thread:$0]  (!%p4161_p12), %s606_s5, 4096, %s608_s0, %s4198_s28, %s4005_s12, %s4005_s12, %s4006_s24  }
  0x73   : > { %s4007_s15 = smov [#allocation6]  }
  0x74   : > { %s509_s9 = sshll.u32 %s4007_s15, 4  ;;  %s510_s9 = int_to_ptr.vmem [resolvable:$true] %s509_s9 }
  0x75   : > { %s3865_s10 = scalar_lea.vmem %s510_s9, 32  ;;  %p3873_p6 = scmp.lt.s32.totalorder %s510_s9, %s510_s9 }
  0x76   : > { %p3866_p7 = scmp.ne.s32.totalorder %s510_s9, %s3865_s10  ;;  %p3874_p0 = scmp.lt.s32.totalorder %s3865_s10, %s3865_s10 }
  0x78   : > { %p3868_p9 = pnand %p3866_p7, %p3718_p13  ;;  %p3875_p3 = por %p3874_p0, %p3873_p6 }
  0x7a   : > { %p3869_p4 = pneg %p3868_p9 }
  0x7c   : > { %p3876_p1 = pnand %p3875_p3, %p3869_p4 }
  0x7e   : > { %3879 = shalt.err (!%p3876_p1)
}
  0x7f   : > { %s4008_s20 = smov 1   ;;  %s4796_s1 = sld [smem:[#allocation24_spill]] }
  0x80   : > { %s4797_s8 = sld [smem:[#allocation31_spill]]  ;;  %s628_s14 = scalar_lea.vmem [#allocation12], %s3210_s7 }
  0x81   : > { %s635_s12 = sshll.u32 %s628_s14, 4  ;;  %s4009_s18 = smov [#allocation12]   ;;  %s636_s12 = int_to_ptr.vmem [resolvable:$true] %s635_s12 }
  0x82   : > { %s3893_s15 = scalar_lea.vmem %s636_s12, 4096  ;;  %s3898_s10 = sshll.u32 %s4009_s18, 4  ;;  %s3899_s10 = int_to_ptr.vmem [resolvable:$false] %s3898_s10 }
  0x83   : > { %p3894_p6 = scmp.ne.s32.totalorder %s636_s12, %s3893_s15  ;;  %s3900_s17 = scalar_lea.vmem %s3899_s10, 8192 }
  0x84   : > { %p3901_p5 = scmp.lt.s32.totalorder %s636_s12, %s3899_s10 }
  0x85   : > { %3554 = dma.hbm_to_vmem [thread:$0]  (!%p4157_p11), %s4796_s1, 32, %s510_s9, [#allocation7], %s4006_s24, %s4006_s24, %s4008_s20  }
  0x86   : > { %s634_s23 = scalar_lea.hbm %s4797_s8, %s3262_s11  ;;  %p3896_p13 = pnand %p3894_p6, %p4202_p10 }
  0x87   : > { %p3902_p11 = scmp.lt.s32.totalorder %s3900_s17, %s3893_s15 }
  0x88   : > { %p3897_p2 = pneg %p3896_p13 }
  0x89   : > { %p3903_p7 = por %p3902_p11, %p3901_p5 }
  0x8b   : > { %p3904_p9 = pnand %p3903_p7, %p3897_p2 }
  0x8d   : > { %3907 = shalt.err (!%p3904_p9)
}
  0x8e   : > { %3570 = dma.hbm_to_vmem [thread:$0]  (!%p4161_p12), %s634_s23, 4096, %s636_s12, %s4198_s28, %s4794_s16, %s4794_s16, %s4793_s2  }
  0x8f   : > { %677 = sbr.rel (%p4148_p8) target bundleno = 3863 (0xf17), region = 84  ;;  %p4798_p10 = scmp.eq.s32.totalorder (!%p4148_p8), %s4132_s27, 0 }
  0x94   : > { %3957 = dma.done.wait (%p4798_p10), [#allocation4], 256   ;;  %p4799_p4 = pmov %p4798_p10 }
  0x96   : > { %3959 = vsyncadd (%p4799_p4), [#allocation4], 4294967040  ;;  %p4800_p0 = pmov %p4799_p4 }
  0x98   : > { %3961 = dma.done.wait (%p4800_p0), [#allocation7], 32   ;;  %p4801_p3 = pmov %p4800_p0 }
  0x99   : > { %s687_s13 = sand.u32 1, %s4132_s27   ;;  %s689_s26 = sand.u32 1, %s3978_s22  }
  0x9a   : > { %3963 = vsyncadd (%p4801_p3), [#allocation7], 4294967264  ;;  %s3524_s28 = smul.u32 384, %s689_s26  ;;  %s688_s30 = scalar_lea.sflag [#allocation4], %s687_s13 }
  0x9b   : > { %p4802_p8 = scmp.ne.s32.totalorder %s4781_s29, 0 }
  0x9c   : > { %s4282_s19 = scalar_lea.vmem [#allocation8], %s3524_s28 }
  0x9d   : > { %3965 = dma.done.wait (%p4802_p8), %s688_s30, 16432  }
  0x9e   : > { %3967 = vsyncadd (%p4802_p8), %s688_s30, 4294950864  ;;  %s4803_s2 = sld [smem:[#allocation19_spill]]  ;;  %s3525_s16 = smul.u32 3, %s689_s26 }
  0x9f   : > { %s3219_s7 = sshll.u32 %s689_s26, 7  ;;  %s3220_s11 = sshll.u32 %s689_s26, 8 }
  0xa0   : > { %s4805_s14 = sld [smem:[#allocation30_spill]]  ;;  %s4324_s15 = scalar_lea.vmem [#allocation10], %s3219_s7 }
  0xa1   : > { %s4806_s10 = sld [smem:[#allocation32_spill]]  ;;  %s4326_s18 = scalar_lea.vmem [#allocation11], %s3220_s11 }
  0xa2   : > { %s4807_s28 = sld [smem:[#allocation33_spill]] }
  0xa3   : > { %s4808_s1 = sld [smem:[#allocation34_spill]] }
  0xa4   : > { %p815_p12 = scmp.lt.s32.totalorder %s4803_s2, 1  ;;  %s4809_s29 = sld [smem:[#allocation35_spill]] }
  0xa5   : > { %p3223_p1 = scmp.ne.s32.totalorder %s4803_s2, 0 }
  0xa6   : > { %s4290_s24 = scalar_select %p815_p12, %s4803_s2, 1 }
  0xa8   : > { %s3222_s5 = sshll.u32 %s4290_s24, 1  ;;  %s824_s17 = scalar_lea.vmem %s4806_s10, %s4290_s24 }
  0xa9   : > { %s4300_s12 = scalar_lea.vmem %s4805_s14, %s3222_s5  ;;  %s827_s30 = scalar_lea.vmem %s4807_s28, %s4290_s24 }
  0xaa   : > { %s830_s3 = scalar_lea.vmem %s4808_s1, %s4290_s24  ;;  %s833_s6 = scalar_lea.vmem %s4809_s29, %s4290_s24 }
  0xab   : > { %s4810_s5 = sld [smem:[#allocation36_spill]]  ;;  %s4322_s14 = scalar_lea.vmem [#allocation9], %s3525_s16 }
  0xac   : > { %s4328_s10 = scalar_lea.vmem [#allocation12], %s3220_s11 }
  0xad   : > { %841 = sbr.rel (%p3223_p1) target bundleno = 180 (0xb4), region = 116 }
  0xb1   : > { %s836_s23 = scalar_lea.vmem %s4810_s5, %s4290_s24 }
  0xb2   : > { %v842_v0 = vld [vmem:[#allocation3] sm:$0xff]  ;;  %v843_v1 = vld [vmem:[#allocation3 + $0x8] sm:$0xff] }
  0xb3   : > { %844 = vst [vmem:[#allocation2] sm:$0xff] %v842_v0  ;;  %845 = vst [vmem:[#allocation2 + $0x8] sm:$0xff] %v843_v1 }
  0xb4 PF: > { %v956_v12 = vld [vmem:[%s4282_s19 + $0x170] sm:$0xff]  ;;  %v955_v13 = vld [vmem:[%s4282_s19 + $0x168] sm:$0xff]  ;;  %v953_v14 = vld [vmem:[%s4282_s19 + $0x158] sm:$0xff]  ;;  %v4010_v28 = vmov 0.0   ;;  %vm4011_vm4 = vmmov 0   ;;  %vm1127_vm5 = vcmask 261120  }
  0xb5   : > { %975 = vmatprep.subr.mxu0 %v956_v12  ;;  %v952_v15 = vld [vmem:[%s4282_s19 + $0x150] sm:$0xff]  ;;  %v950_v16 = vld [vmem:[%s4282_s19 + $0x140] sm:$0xff]  ;;  %v949_v17 = vld [vmem:[%s4282_s19 + $0x138] sm:$0xff]  ;;  %1039 = vmatprep.mubr.f32.mxu0 %v4010_v28  ;;  %vm1212_vm7 = vcmask 64512   ;;  %s4013_s7 = smov 64   ;;  %s4014_s11 = smov 32  }
  0xb6   : > { %976 = vmatpush1.msra.mxu0 %v955_v13  ;;  %v947_v18 = vld [vmem:[%s4282_s19 + $0x128] sm:$0xff]  ;;  %v946_v19 = vld [vmem:[%s4282_s19 + $0x120] sm:$0xff]  ;;  %v944_v20 = vld [vmem:[%s4282_s19 + $0x110] sm:$0xff]  ;;  %vm1812_vm9 = vcmask 523264   ;;  %vm1814_vm10 = vcmask 785408   ;;  %s4813_s26 = sld [smem:[#allocation28_spill]] }
  0xb7   : > { %977 = vmatprep.subr.mxu0 %v953_v14  ;;  %v943_v21 = vld [vmem:[%s4282_s19 + $0x108] sm:$0xff]  ;;  %v941_v22 = vld [vmem:[%s4282_s19 + $0xf8] sm:$0xff]  ;;  %v940_v23 = vld [vmem:[%s4282_s19 + $0xf0] sm:$0xff] }
  0xb8   : > { %978 = vmatpush1.msra.mxu0 %v952_v15  ;;  %v938_v24 = vld [vmem:[%s4282_s19 + $0xe0] sm:$0xff]  ;;  %v937_v25 = vld [vmem:[%s4282_s19 + $0xd8] sm:$0xff]  ;;  %v935_v26 = vld [vmem:[%s4282_s19 + $0xc8] sm:$0xff] }
  0xb9   : > { %979 = vmatprep.subr.mxu0 %v950_v16  ;;  %v934_v27 = vld [vmem:[%s4282_s19 + $0xc0] sm:$0xff]  ;;  %v932_v29 = vld [vmem:[%s4282_s19 + $0xb0] sm:$0xff]  ;;  %v931_v30 = vld [vmem:[%s4282_s19 + $0xa8] sm:$0xff] }
  0xba   : > { %v846_v2 = vld [vmem:[#allocation2] sm:$0xff]  ;;  %v847_v3 = vld [vmem:[#allocation2 + $0x8] sm:$0xff]  ;;  %980 = vmatpush1.msra.mxu0 %v949_v17  ;;  %v928_v33 = vld [vmem:[%s4282_s19 + $0x90] sm:$0xff] }
  0xbb   : > { %856 = vadd.xlane.f32.xlu0 %v846_v2  ;;  %858 = vadd.xlane.f32.xlu1 %v847_v3  ;;  %v929_v31 = vld [vmem:[%s4282_s19 + $0x98] sm:$0xff]  ;;  %v954_v34 = vld [vmem:[%s4282_s19 + $0x160] sm:$0xff]  ;;  %v951_v36 = vld [vmem:[%s4282_s19 + $0x148] sm:$0xff] }
  0xbc   : > { %981 = vmatprep.subr.mxu0 %v947_v18  ;;  %v957_v32 = vld [vmem:[%s4282_s19 + $0x178] sm:$0xff]  ;;  %v926_v35 = vld [vmem:[%s4282_s19 + $0x80] sm:$0xff]  ;;  %v923_v38 = vld [vmem:[%s4282_s19 + $0x68] sm:$0xff]  ;;  %s4814_s28 = scalar_lea.vmem %s4813_s26, %s4290_s24 }
  0xbd   : > { %982 = vmatpush1.msra.mxu0 %v946_v19  ;;  %3370 = vmatprep.subr.mxu1 %v957_v32  ;;  %v925_v37 = vld [vmem:[%s4282_s19 + $0x78] sm:$0xff]  ;;  %v948_v39 = vld [vmem:[%s4282_s19 + $0x130] sm:$0xff]  ;;  %v922_v40 = vld [vmem:[%s4282_s19 + $0x60] sm:$0xff] }
  0xbe   : > { %983 = vmatprep.subr.mxu0 %v944_v20  ;;  %3371 = vmatpush3.msra.mxu1 %v957_v32  ;;  %v920_v41 = vld [vmem:[%s4282_s19 + $0x50] sm:$0xff]  ;;  %v919_v42 = vld [vmem:[%s4282_s19 + $0x48] sm:$0xff]  ;;  %v917_v43 = vld [vmem:[%s4282_s19 + $0x38] sm:$0xff] }
  0xbf   : > { %984 = vmatpush1.msra.mxu0 %v943_v21  ;;  %3372 = vmatprep.subr.mxu1 %v954_v34  ;;  %v916_v44 = vld [vmem:[%s4282_s19 + $0x30] sm:$0xff]  ;;  %v914_v45 = vld [vmem:[%s4282_s19 + $0x20] sm:$0xff]  ;;  %v913_v46 = vld [vmem:[%s4282_s19 + $0x18] sm:$0xff] }
  0xc0   : > { %985 = vmatprep.subr.mxu0 %v941_v22  ;;  %3373 = vmatpush3.msra.mxu1 %v954_v34  ;;  %v911_v47 = vld [vmem:[%s4282_s19 + $0x8] sm:$0xff]  ;;  %v945_v48 = vld [vmem:[%s4282_s19 + $0x118] sm:$0xff]  ;;  %v910_v49 = vld [vmem:[%s4282_s19] sm:$0xff] }
  0xc1   : > { %986 = vmatpush1.msra.mxu0 %v940_v23  ;;  %3374 = vmatprep.subr.mxu1 %v951_v36  ;;  %v942_v50 = vld [vmem:[%s4282_s19 + $0x100] sm:$0xff]  ;;  %v939_v51 = vld [vmem:[%s4282_s19 + $0xe8] sm:$0xff]  ;;  %v936_v52 = vld [vmem:[%s4282_s19 + $0xd0] sm:$0xff] }
  0xc2   : > { %987 = vmatprep.subr.mxu0 %v938_v24  ;;  %3375 = vmatpush3.msra.mxu1 %v951_v36  ;;  %v933_v53 = vld [vmem:[%s4282_s19 + $0xb8] sm:$0xff]  ;;  %v930_v54 = vld [vmem:[%s4282_s19 + $0xa0] sm:$0xff]  ;;  %v927_v55 = vld [vmem:[%s4282_s19 + $0x88] sm:$0xff] }
  0xc3   : > { %988 = vmatpush1.msra.mxu0 %v937_v25  ;;  %3376 = vmatprep.subr.mxu1 %v948_v39  ;;  %v924_v56 = vld [vmem:[%s4282_s19 + $0x70] sm:$0xff]  ;;  %v921_v57 = vld [vmem:[%s4282_s19 + $0x58] sm:$0xff]  ;;  %v918_v58 = vld [vmem:[%s4282_s19 + $0x40] sm:$0xff] }
  0xc4   : > { %989 = vmatprep.subr.mxu0 %v935_v26  ;;  %3377 = vmatpush3.msra.mxu1 %v948_v39  ;;  %v915_v59 = vld [vmem:[%s4282_s19 + $0x28] sm:$0xff]  ;;  %v912_v60 = vld [vmem:[%s4282_s19 + $0x10] sm:$0xff]  ;;  %v3224_v15 = vld [vmem:[%s827_s30] ss:$0 sm:$0xff] }
  0xc5   : > { %990 = vmatpush1.msra.mxu0 %v934_v27  ;;  %3378 = vmatprep.subr.mxu1 %v945_v48  ;;  %v3225_v19 = vld [vmem:[%s830_s3] ss:$0 sm:$0xff]  ;;  %v958_v27 = vld [vmem:[%s4322_s14] sm:$0x7]  ;;  %s4012_s3 = smov 96   ;;  %s4818_s14 = sld [smem:[#allocation19_spill]] }
  0xc6   : > { %991 = vmatprep.subr.mxu0 %v932_v29  ;;  %3379 = vmatpush3.msra.mxu1 %v945_v48 }
  0xc7   : > { %992 = vmatpush1.msra.mxu0 %v931_v30  ;;  %3380 = vmatprep.subr.mxu1 %v942_v50 }
  0xc8   : > { %993 = vmatprep.subr.mxu0 %v929_v31  ;;  %3381 = vmatpush3.msra.mxu1 %v942_v50 }
  0xc9   : > { %994 = vmatpush1.msra.mxu0 %v928_v33  ;;  %3382 = vmatprep.subr.mxu1 %v939_v51 }
  0xca   : > { %995 = vmatprep.subr.mxu0 %v926_v35  ;;  %3383 = vmatpush3.msra.mxu1 %v939_v51 }
  0xcb   : > { %996 = vmatpush1.msra.mxu0 %v925_v37  ;;  %3384 = vmatprep.subr.mxu1 %v936_v52  ;;  %p3254_p6 = scmp.ne.s32.totalorder %s4818_s14, 1 }
  0xcc   : > { %997 = vmatprep.subr.mxu0 %v923_v38  ;;  %3385 = vmatpush3.msra.mxu1 %v936_v52  ;;  %s4820_s1 = sld [smem:[#allocation38_spill]] (!%p3254_p6) }
  0xcd   : > { %998 = vmatpush1.msra.mxu0 %v922_v40  ;;  %3386 = vmatprep.subr.mxu1 %v933_v53 }
  0xce   : > { %999 = vmatprep.subr.mxu0 %v920_v41  ;;  %3387 = vmatpush3.msra.mxu1 %v933_v53 }
  0xcf   : > { %1000 = vmatpush1.msra.mxu0 %v919_v42  ;;  %3388 = vmatprep.subr.mxu1 %v930_v54 }
  0xd0   : > { %1001 = vmatprep.subr.mxu0 %v917_v43  ;;  %3389 = vmatpush3.msra.mxu1 %v930_v54  ;;  %v848_v43 = vld [vmem:[#allocation6] sm:$0x1] }
  0xd1   : > { %1002 = vmatpush1.msra.mxu0 %v916_v44  ;;  %3390 = vmatprep.subr.mxu1 %v927_v55  ;;  %vm850_vm6 = vcmp.eq.f32.partialorder %v848_v43, 0.0 }
  0xd2   : > { %1003 = vmatprep.subr.mxu0 %v914_v45  ;;  %3391 = vmatpush3.msra.mxu1 %v927_v55  ;;  %v852_v44 = vsel %vm850_vm6, -1e+09, %v4010_v28 }
  0xd3   : > { %1004 = vmatpush1.msra.mxu0 %v913_v46  ;;  %3392 = vmatprep.subr.mxu1 %v924_v56 }
  0xd4   : > { %1005 = vmatprep.subr.mxu0 %v911_v47  ;;  %3393 = vmatpush3.msra.mxu1 %v924_v56 }
  0xd5   : > { %1006 = vmatpush1.msra.mxu0 %v910_v49  ;;  %3394 = vmatprep.subr.mxu1 %v921_v57 }
  0xd6   : > { %3405 = vmatprep.subr.mxu0 %v4010_v28  ;;  %3395 = vmatpush3.msra.mxu1 %v921_v57 }
  0xd7   : > { %3396 = vmatprep.subr.mxu1 %v918_v58 }
  0xd8   : > { %3397 = vmatpush3.msra.mxu1 %v918_v58 }
  0xd9   : > { %3398 = vmatprep.subr.mxu1 %v915_v59 }
  0xda   : > { %3399 = vmatpush3.msra.mxu1 %v915_v59 }
  0xdb   : > { %3400 = vmatprep.subr.mxu1 %v912_v60 }
  0xdc   : > { %3401 = vmatpush3.msra.mxu1 %v912_v60 }
  0xdd   : > { %3435 = vmatprep.subr.mxu1 %v4010_v28 }
 0x144   : > { %v857_v4 = vpop.xlane.xlu0 %856  ;;  %v859_v5 = vpop.xlane.xlu1 %858 }
 0x145   : > { %v861_v6 = vmul.f32 0.0078125, %v857_v4  ;;  %v862_v7 = vmul.f32 0.0078125, %v859_v5 }
 0x147   : > { %v4331_v8 = vsub.f32 %v846_v2, %v861_v6  ;;  %v4333_v9 = vsub.f32 %v847_v3, %v862_v7 }
 0x149   : > { %v865_v10 = vmul.f32 %v4331_v8, %v4331_v8  ;;  %v866_v11 = vmul.f32 %v4333_v9, %v4333_v9  ;;  %v899_v16 = vmul.f32 %v3224_v15, %v4333_v9  ;;  %v898_v17 = vmul.f32 %v3224_v15, %v4331_v8 }
 0x14a   : > { %v960_v8 = vlaneseq }
 0x14b   : > { %867 = vadd.xlane.f32.xlu0 %v865_v10  ;;  %869 = vadd.xlane.f32.xlu1 %v866_v11 }
 0x14c   : > { %v4407_v9 = vshrl.u32 %v960_v8, 7 }
 0x14e   : > { %v970_v25 = vsub.s32 2, %v4407_v9  ;;  %v966_v26 = vsub.s32 1, %v4407_v9  ;;  %v4413_v29 = vsub.s32 0, %v4407_v9  ;;  %v3253_v9 = vld [vmem:[%s824_s17] ss:$0 sm:$0xff] }
 0x150   : > { %v971_v30 = vrot.slane %v958_v27, %v970_v25  ;;  %v4417_v31 = vrot.slane %v958_v27, %v966_v26  ;;  %v963_v34 = vrot.slane %v958_v27, %v4413_v29  ;;  %v4439_v46 = vrot.slane %v852_v44, %v4413_v29  ;;  %v849_v27 = vld [vmem:[#allocation6 + $0x1] sm:$0x1] }
 0x151   : > { %vm851_vm8 = vcmp.eq.f32.partialorder %v849_v27, 0.0 }
 0x1d4   : > { %v868_v61 = vpop.xlane.xlu0 %867  ;;  %v870_v62 = vpop.xlane.xlu1 %869 }
 0x1d5   : > { %v872_v63 = vmul.f32 0.007874016, %v868_v61  ;;  %v873_v0 = vmul.f32 0.007874016, %v870_v62 }
 0x1d7   : > { %3658 = vrsqrt.f32 %v872_v63  ;;  %vm883_vm0 = vcmp.eq.f32.partialorder %v873_v0, inf  ;;  %v886_v4 = vand.u32 2147483648, %v873_v0  ;;  %vm876_vm1 = vcmp.eq.f32.partialorder %v872_v63, inf }
 0x1d8   : > { %3660 = vrsqrt.f32 %v873_v0  ;;  %v879_v5 = vand.u32 2147483648, %v872_v63  ;;  %vm885_vm2 = vcmp.eq.f32.partialorder %v873_v0, 0.0  ;;  %vm878_vm3 = vcmp.eq.f32.partialorder %v872_v63, 0.0 }
 0x1e4   : > { %v3659_v1 = vpop.eup %3658 }
 0x1e5   : > { %v3661_v2 = vpop.eup %3660  ;;  %v875_v3 = vmul.f32 %v3659_v1, %v872_v63 }
 0x1e6   : > { %v882_v6 = vmul.f32 %v3661_v2, %v873_v0 }
 0x1e7   : > { %v877_v7 = vsel %vm876_vm1, %v872_v63, %v875_v3 }
 0x1e8   : > { %v884_v10 = vsel %vm883_vm0, %v873_v0, %v882_v6  ;;  %v880_v11 = vsel %vm878_vm3, %v879_v5, %v877_v7 }
 0x1e9   : > { %v888_v12 = vadd.f32 1e-06, %v880_v11  ;;  %v887_v13 = vsel %vm885_vm2, %v886_v4, %v884_v10 }
 0x1ea   : > { %v889_v14 = vadd.f32 1e-06, %v887_v13 }
 0x1eb   : > { %3662 = vrcp.f32 %v888_v12 }
 0x1ec   : > { %3664 = vrcp.f32 %v889_v14 }
 0x1f8   : > { %v3663_v18 = vpop.eup %3662 }
 0x1f9   : > { %v3665_v20 = vpop.eup %3664  ;;  %v900_v21 = vmul.f32 %v3663_v18, %v898_v17 }
 0x1fa   : > { %v901_v22 = vmul.f32 %v3665_v20, %v899_v16 }
 0x1fb   : > { %v908_v23 = vadd.f32 %v3225_v19, %v900_v21 }
 0x1fc   : > { %v909_v24 = vadd.f32 %v3225_v19, %v901_v22 }
 0x1fd   : > { %1040 = vmatmul.mubr.f32.vlgmr.msra.gmra.mxu0 %v908_v23  ;;  %3402 = vmatprep.mubr.f32.mxu1 %v908_v23 }
 0x1fe   : > { %1045 = vmatprep.mubr.f32.mxu0 %v4010_v28  ;;  %3403 = vmatmul.mubr.f32.vlgmr.msra.gmra.mxu1 %v909_v24 }
 0x1ff   : > { %3437 = vmatprep.mubr.msk.f32.mxu1 %vm4011_vm4, %v4010_v28 }
 0x201   : > { %1046 = vmatmul.mubr.f32.gmra.mxu0 %v909_v24 }
 0x202   : > { %3407 = vmatprep.mubr.msk.f32.mxu0 %vm4011_vm4, %v4010_v28 }
 0x2bd   : > { %v1041_v32 = vpop.f32.mrf.mxu0 }
 0x2be   : > { %v3404_v33 = vpop.f32.mrf.mxu1  ;;  %v4428_v42 = vadd.f32 %v1041_v32, %v963_v34 }
 0x2bf   : > { %v1043_v35 = vpop.f32.mrf.mxu0  ;;  %v4420_v36 = vadd.f32 %v3404_v33, %v971_v30 }
 0x2c0   : > { %v1044_v37 = vadd.f32 %v1043_v35, %v4417_v31  ;;  %v1118_v38 = vpop.f32.mrf.mxu1 }
 0x2c1   : > { %v1047_v39 = vpop.f32.mrf.mxu0  ;;  %v4426_v41 = vadd.f32 %v1118_v38, %v971_v30 }
 0x2c2   : > { %3406 = vmatpush3.xpose.msk.msra.mxu0 %vm1127_vm5, %v1044_v37  ;;  %v4424_v40 = vadd.f32 %v1047_v39, %v963_v34 }
 0x2c3   : > { %3410 = vmatprep.subr.mxu0 %v4010_v28  ;;  %v1049_v45 = vpop.f32.mrf.mxu0 }
 0x2c4   : > { %v1050_v5 = vadd.f32 %v1049_v45, %v4417_v31  ;;  %v853_v31 = vsel %vm851_vm8, -1e+09, %v4010_v28 }
 0x2c5   : > { %3408 = vmatmul.mubr.msk.f32.vlgmr.msra.gmra.mxu0 %vm1127_vm5, %v4428_v42  ;;  %v1897_v35 = vrot.slane %v853_v31, %v4413_v29 }
 0x2c6   : > { %3411 = vmatpush3.msra.mxu0 %v4426_v41  ;;  %3412 = vmatprep.mubr.msk.f32.mxu0 %vm4011_vm4, %v4010_v28 }
 0x2c7   : > { %3415 = vmatprep.subr.mxu0 %v4010_v28 }
 0x385   : > { %v1200_v47 = vpop.f32.mrf.mxu0 }
 0x386   : > { %v1204_v48 = vmul.f32 0.17677669, %v1200_v47 }
 0x387   : > { %v3409_v49 = vpop.f32.mrf.mxu0 }
 0x388   : > { %v1211_v50 = vadd.f32 %v4439_v46, %v1204_v48 }
 0x38a   : > { %v1213_v51 = vsel %vm1212_vm7, %v1211_v50, -inf }
 0x38b   : > { %1214 = vmax.xlane.f32.xlu0 %v1213_v51 }
 0x3a1   : > { %1299 = vrot.lane.b32.xlu0 %v1044_v37, %s4012_s3 }
 0x414   : > { %v1215_v52 = vpop.xlane.xlu0 %1214 }
 0x415   : > { %v1216_v53 = vsub.f32 %v1211_v50, %v1215_v52 }
 0x417   : > { %v1217_v54 = vmul.f32 1.442695, %v1216_v53 }
 0x418   : > { %v1300_v60 = vpop.permute.xlu0 %1299 }
 0x419   : > { %3666 = vpow2.f32 %v1217_v54 }
 0x426   : > { %v3667_v55 = vpop.eup %3666 }
 0x427   : > { %v1219_v56 = vsel %vm1212_vm7, %v3667_v55, 0.0 }
 0x428   : > { %1220 = vadd.xlane.f32.xlu1 %v1219_v56 }
 0x439   : > { %1297 = vrot.lane.b32.xlu1 %v4428_v42, %s4012_s3 }
 0x4b1   : > { %v1221_v57 = vpop.xlane.xlu1 %1220 }
 0x4b2   : > { %3668 = vrcp.f32 %v1221_v57 }
 0x4b5   : > { %v1298_v61 = vpop.permute.xlu1 %1297 }
 0x4bf   : > { %v3669_v58 = vpop.eup %3668 }
 0x4c0   : > { %v1223_v59 = vmul.f32 %v3669_v58, %v3667_v55 }
 0x4c2   : > { %3413 = vmatmul.mubr.msk.f32.vlgmr.msra.gmra.mxu0 %vm1212_vm7, %v1223_v59 }
 0x4c3   : > { %3416 = vmatpush3.xpose.msk.msra.mxu0 %vm1127_vm5, %v1300_v60  ;;  %3417 = vmatprep.mubr.msk.f32.mxu0 %vm4011_vm4, %v4010_v28 }
 0x4c4   : > { %3420 = vmatprep.subr.mxu0 %v4010_v28 }
 0x4c6   : > { %3418 = vmatmul.mubr.msk.f32.vlgmr.msra.gmra.mxu0 %vm1127_vm5, %v1298_v61 }
 0x4c7   : > { %3422 = vmatprep.mubr.msk.f32.mxu0 %vm4011_vm4, %v4010_v28 }
 0x582   : > { %v4455_v62 = vpop.f32.mrf.mxu0 }
 0x584   : > { %v3414_v63 = vpop.f32.mrf.mxu0 }
 0x586   : > { %v1371_v0 = vpop.f32.mrf.mxu0 }
 0x587   : > { %v1375_v1 = vmul.f32 0.17677669, %v1371_v0 }
 0x588   : > { %v3419_v2 = vpop.f32.mrf.mxu0 }
 0x589   : > { %v1376_v3 = vadd.f32 %v1375_v1, %v4439_v46 }
 0x58b   : > { %v1377_v4 = vsel %vm1212_vm7, %v1376_v3, -inf }
 0x58c   : > { %1378 = vmax.xlane.f32.xlu1 %v1377_v4 }
 0x59d   : > { %1467 = vrot.lane.b32.xlu1 %v1044_v37, %s4013_s7 }
 0x5a1   : > { %1465 = vrot.lane.b32.xlu1 %v4428_v42, %s4013_s7 }
 0x5a5   : > { %1634 = vrot.lane.b32.xlu1 %v1044_v37, %s4014_s11 }
 0x5a9   : > { %1986 = vrot.lane.b32.xlu1 %v1050_v5, %s4012_s3 }
 0x5ad   : > { %2154 = vrot.lane.b32.xlu1 %v1050_v5, %s4013_s7 }
 0x5b1   : > { %2321 = vrot.lane.b32.xlu1 %v1050_v5, %s4014_s11 }
 0x615   : > { %v1379_v6 = vpop.xlane.xlu1 %1378 }
 0x616   : > { %v1380_v7 = vsub.f32 %v1376_v3, %v1379_v6 }
 0x618   : > { %v1381_v10 = vmul.f32 1.442695, %v1380_v7 }
 0x619   : > { %v1468_v11 = vpop.permute.xlu1 %1467 }
 0x61a   : > { %3670 = vpow2.f32 %v1381_v10 }
 0x61d   : > { %v1466_v12 = vpop.permute.xlu1 %1465 }
 0x621   : > { %v1635_v13 = vpop.permute.xlu1 %1634 }
 0x622   : > { %3436 = vmatpush3.xpose.msk.msra.mxu1 %vm1127_vm5, %v1635_v13 }
 0x623   : > { %3445 = vmatprep.subr.mxu1 %v4010_v28 }
 0x625   : > { %v1987_v19 = vpop.permute.xlu1 %1986 }
 0x627   : > { %v3671_v14 = vpop.eup %3670 }
 0x628   : > { %v1383_v15 = vsel %vm1212_vm7, %v3671_v14, 0.0 }
 0x629   : > { %1384 = vadd.xlane.f32.xlu0 %v1383_v15  ;;  %v2155_v22 = vpop.permute.xlu1 %2154 }
 0x62d   : > { %v2322_v8 = vpop.permute.xlu1 %2321 }
 0x63f   : > { %1389 = vrot.lane.b32.xlu0 %v4426_v41, %s4012_s3 }
 0x643   : > { %1632 = vrot.lane.b32.xlu0 %v4428_v42, %s4014_s11 }
 0x647   : > { %1984 = vrot.lane.b32.xlu0 %v4424_v40, %s4012_s3 }
 0x64b   : > { %2152 = vrot.lane.b32.xlu0 %v4424_v40, %s4013_s7 }
 0x64f   : > { %2319 = vrot.lane.b32.xlu0 %v4424_v40, %s4014_s11 }
 0x6b2   : > { %v1385_v16 = vpop.xlane.xlu0 %1384 }
 0x6b3   : > { %3672 = vrcp.f32 %v1385_v16 }
 0x6b6   : > { %v1390_v17 = vpop.permute.xlu0 %1389 }
 0x6b7   : > { %3421 = vmatpush3.msra.mxu0 %v1390_v17 }
 0x6b8   : > { %3425 = vmatprep.subr.mxu0 %v4010_v28 }
 0x6ba   : > { %v1633_v18 = vpop.permute.xlu0 %1632 }
 0x6bb   : > { %3438 = vmatmul.mubr.msk.f32.vlgmr.msra.gmra.mxu1 %vm1127_vm5, %v1633_v18 }
 0x6bc   : > { %3446 = vmatpush3.xpose.msk.msra.mxu1 %vm1127_vm5, %v1050_v5  ;;  %3447 = vmatprep.mubr.msk.f32.mxu1 %vm4011_vm4, %v4010_v28 }
 0x6bd   : > { %3455 = vmatprep.subr.mxu1 %v4010_v28 }
 0x6be   : > { %v1985_v20 = vpop.permute.xlu0 %1984 }
 0x6bf   : > { %3448 = vmatmul.mubr.msk.f32.vlgmr.msra.gmra.mxu1 %vm1127_vm5, %v4424_v40 }
 0x6c0   : > { %v3673_v21 = vpop.eup %3672  ;;  %3456 = vmatpush3.xpose.msk.msra.mxu1 %vm1127_vm5, %v1987_v19  ;;  %3457 = vmatprep.mubr.msk.f32.mxu1 %vm4011_vm4, %v4010_v28 }
 0x6c1   : > { %3465 = vmatprep.subr.mxu1 %v4010_v28  ;;  %v1387_v23 = vmul.f32 %v3673_v21, %v3671_v14 }
 0x6c2   : > { %v2153_v24 = vpop.permute.xlu0 %2152 }
 0x6c3   : > { %3423 = vmatmul.mubr.msk.f32.vlgmr.msra.gmra.mxu0 %vm1212_vm7, %v1387_v23  ;;  %3458 = vmatmul.mubr.msk.f32.vlgmr.msra.gmra.mxu1 %vm1127_vm5, %v1985_v20 }
 0x6c4   : > { %3426 = vmatpush3.xpose.msk.msra.mxu0 %vm1127_vm5, %v1468_v11  ;;  %3466 = vmatpush3.xpose.msk.msra.mxu1 %vm1127_vm5, %v2155_v22 }
 0x6c5   : > { %3427 = vmatprep.mubr.msk.f32.mxu0 %vm4011_vm4, %v4010_v28  ;;  %3467 = vmatprep.mubr.msk.f32.mxu1 %vm4011_vm4, %v4010_v28 }
 0x6c6   : > { %3475 = vmatprep.subr.mxu1 %v4010_v28  ;;  %3430 = vmatprep.subr.mxu0 %v4010_v28  ;;  %v2320_v25 = vpop.permute.xlu0 %2319 }
 0x6c7   : > { %3428 = vmatmul.mubr.msk.f32.vlgmr.msra.gmra.mxu0 %vm1127_vm5, %v1466_v12  ;;  %3468 = vmatmul.mubr.msk.f32.vlgmr.msra.gmra.mxu1 %vm1127_vm5, %v2153_v24 }
 0x6c8   : > { %3476 = vmatpush3.xpose.msk.msra.mxu1 %vm1127_vm5, %v2322_v8  ;;  %3477 = vmatprep.mubr.msk.f32.mxu1 %vm4011_vm4, %v4010_v28 }
 0x6c9   : > { %3432 = vmatprep.mubr.msk.f32.mxu0 %vm4011_vm4, %v4010_v28 }
 0x6cb   : > { %3478 = vmatmul.mubr.msk.f32.vlgmr.msra.gmra.mxu1 %vm1127_vm5, %v2320_v25 }
 0x77b   : > { %v1706_v30 = vpop.f32.mrf.mxu1 }
 0x77c   : > { %v1710_v32 = vmul.f32 0.17677669, %v1706_v30 }
 0x77d   : > { %v3439_v33 = vpop.f32.mrf.mxu1 }
 0x77e   : > { %v1711_v34 = vadd.f32 %v1710_v32, %v4439_v46 }
 0x77f   : > { %v1888_v37 = vpop.f32.mrf.mxu1 }
 0x780   : > { %v1892_v38 = vmul.f32 0.17677669, %v1888_v37  ;;  %v1712_v39 = vsel %vm1212_vm7, %v1711_v34, -inf }
 0x781   : > { %1713 = vmax.xlane.f32.xlu0 %v1712_v39  ;;  %v3449_v40 = vpop.f32.mrf.mxu1 }
 0x782   : > { %v1899_v42 = vadd.f32 %v1897_v35, %v1892_v38 }
 0x783   : > { %v4514_v43 = vpop.f32.mrf.mxu0  ;;  %v2058_v44 = vpop.f32.mrf.mxu1 }
 0x784   : > { %v2062_v45 = vmul.f32 0.17677669, %v2058_v44  ;;  %v1900_v47 = vsel %vm1212_vm7, %v1899_v42, -inf }
 0x785   : > { %1901 = vmax.xlane.f32.xlu0 %v1900_v47  ;;  %v3424_v48 = vpop.f32.mrf.mxu0  ;;  %v3459_v49 = vpop.f32.mrf.mxu1 }
 0x786   : > { %v2063_v50 = vadd.f32 %v2062_v45, %v1897_v35 }
 0x787   : > { %v1539_v51 = vpop.f32.mrf.mxu0  ;;  %v2226_v52 = vpop.f32.mrf.mxu1 }
 0x788   : > { %v1543_v53 = vmul.f32 0.17677669, %v1539_v51  ;;  %v2230_v54 = vmul.f32 0.17677669, %v2226_v52  ;;  %v2064_v55 = vsel %vm1212_vm7, %v2063_v50, -inf }
 0x789   : > { %2065 = vmax.xlane.f32.xlu0 %v2064_v55  ;;  %v3429_v56 = vpop.f32.mrf.mxu0  ;;  %v3469_v57 = vpop.f32.mrf.mxu1 }
 0x78a   : > { %v1544_v58 = vadd.f32 %v1543_v53, %v4439_v46  ;;  %v2231_v63 = vadd.f32 %v2230_v54, %v1897_v35 }
 0x78b   : > { %v2393_v59 = vpop.f32.mrf.mxu1 }
 0x78c   : > { %v2397_v60 = vmul.f32 0.17677669, %v2393_v59  ;;  %v1545_v61 = vsel %vm1212_vm7, %v1544_v58, -inf  ;;  %v2232_v3 = vsel %vm1212_vm7, %v2231_v63, -inf }
 0x78d   : > { %v3479_v0 = vpop.f32.mrf.mxu1  ;;  %1546 = vmax.xlane.f32.xlu1 %v1545_v61 }
 0x78e   : > { %v2398_v1 = vadd.f32 %v2397_v60, %v1897_v35  ;;  %v2515_v0 = vld [vmem:[%s4324_s15 + $0x70] sm:$0xff] }
 0x790   : > { %v2399_v2 = vsel %vm1212_vm7, %v2398_v1, -inf }
 0x791   : > { %2400 = vmax.xlane.f32.xlu0 %v2399_v2  ;;  %2233 = vmax.xlane.f32.xlu1 %v2232_v3  ;;  %v2513_v2 = vld [vmem:[%s4324_s15 + $0x60] sm:$0xff]  ;;  %v2512_v3 = vld [vmem:[%s4324_s15 + $0x58] sm:$0xff] }
 0x80a   : > { %v1714_v4 = vpop.xlane.xlu0 %1713 }
 0x80b   : > { %v1715_v5 = vsub.f32 %v1711_v34, %v1714_v4  ;;  %v2511_v4 = vld [vmem:[%s4324_s15 + $0x50] sm:$0xff] }
 0x80d   : > { %v1716_v6 = vmul.f32 1.442695, %v1715_v5  ;;  %v2510_v5 = vld [vmem:[%s4324_s15 + $0x48] sm:$0xff] }
 0x80e   : > { %v1902_v7 = vpop.xlane.xlu0 %1901 }
 0x80f   : > { %3674 = vpow2.f32 %v1716_v6  ;;  %v1903_v46 = vsub.f32 %v1899_v42, %v1902_v7  ;;  %v2509_v6 = vld [vmem:[%s4324_s15 + $0x40] sm:$0xff]  ;;  %v2508_v7 = vld [vmem:[%s4324_s15 + $0x38] sm:$0xff] }
 0x811   : > { %v1904_v10 = vmul.f32 1.442695, %v1903_v46  ;;  %v2507_v46 = vld [vmem:[%s4324_s15 + $0x30] sm:$0xff] }
 0x812   : > { %v2066_v11 = vpop.xlane.xlu0 %2065 }
 0x813   : > { %3676 = vpow2.f32 %v1904_v10  ;;  %v2067_v12 = vsub.f32 %v2063_v50, %v2066_v11 }
 0x815   : > { %v2068_v13 = vmul.f32 1.442695, %v2067_v12  ;;  %v2506_v12 = vld [vmem:[%s4324_s15 + $0x28] sm:$0xff] }
 0x816   : > { %v1547_v14 = vpop.xlane.xlu1 %1546 }
 0x817   : > { %3678 = vpow2.f32 %v2068_v13  ;;  %v1548_v15 = vsub.f32 %v1544_v58, %v1547_v14  ;;  %v2505_v14 = vld [vmem:[%s4324_s15 + $0x20] sm:$0xff] }
 0x819   : > { %v1549_v24 = vmul.f32 1.442695, %v1548_v15 }
 0x81a   : > { %v2401_v16 = vpop.xlane.xlu0 %2400  ;;  %v2234_v17 = vpop.xlane.xlu1 %2233 }
 0x81b   : > { %v2402_v18 = vsub.f32 %v2398_v1, %v2401_v16  ;;  %v2235_v19 = vsub.f32 %v2231_v63, %v2234_v17  ;;  %v2516_v63 = vld [vmem:[%s4324_s15 + $0x78] sm:$0xff]  ;;  %v2514_v1 = vld [vmem:[%s4324_s15 + $0x68] sm:$0xff]  ;;  %v2503_v17 = vld [vmem:[%s4324_s15 + $0x10] sm:$0xff] }
 0x81c   : > { %v3675_v20 = vpop.eup %3674  ;;  %3485 = vmatprep.subr.mxu1 %v2516_v63  ;;  %v2504_v16 = vld [vmem:[%s4324_s15 + $0x18] sm:$0xff] }
 0x81d   : > { %v2403_v21 = vmul.f32 1.442695, %v2402_v18  ;;  %v2236_v22 = vmul.f32 1.442695, %v2235_v19  ;;  %v1718_v23 = vsel %vm1212_vm7, %v3675_v20, 0.0  ;;  %3486 = vmatpush3.msra.mxu1 %v2516_v63 }
 0x81e   : > { %1719 = vadd.xlane.f32.xlu0 %v1718_v23  ;;  %3487 = vmatprep.subr.mxu1 %v2515_v0 }
 0x81f   : > { %3680 = vpow2.f32 %v2403_v21  ;;  %3488 = vmatpush3.msra.mxu1 %v2515_v0  ;;  %v2501_v21 = vld [vmem:[%s4324_s15] sm:$0xff] }
 0x820   : > { %v3677_v8 = vpop.eup %3676  ;;  %3682 = vpow2.f32 %v2236_v22  ;;  %3489 = vmatprep.subr.mxu1 %v2514_v1 }
 0x821   : > { %v1906_v25 = vsel %vm1212_vm7, %v3677_v8, 0.0  ;;  %3684 = vpow2.f32 %v1549_v24  ;;  %3490 = vmatpush3.msra.mxu1 %v2514_v1 }
 0x822   : > { %1907 = vadd.xlane.f32.xlu1 %v1906_v25  ;;  %3491 = vmatprep.subr.mxu1 %v2513_v2 }
 0x823   : > { %3492 = vmatpush3.msra.mxu1 %v2513_v2  ;;  %v2686_v2 = vld [vmem:[%s4326_s18 + $0xf8] sm:$0xff] }
 0x824   : > { %v3679_v27 = vpop.eup %3678  ;;  %3493 = vmatprep.subr.mxu1 %v2512_v3 }
 0x825   : > { %v2070_v30 = vsel %vm1212_vm7, %v3679_v27, 0.0  ;;  %3494 = vmatpush3.msra.mxu1 %v2512_v3  ;;  %v2685_v3 = vld [vmem:[%s4326_s18 + $0xf0] sm:$0xff] }
 0x826   : > { %2071 = vadd.xlane.f32.xlu0 %v2070_v30  ;;  %3495 = vmatprep.subr.mxu1 %v2511_v4 }
 0x827   : > { %3496 = vmatpush3.msra.mxu1 %v2511_v4  ;;  %v2684_v4 = vld [vmem:[%s4326_s18 + $0xe8] sm:$0xff] }
 0x828   : > { %3497 = vmatprep.subr.mxu1 %v2510_v5 }
 0x829   : > { %3498 = vmatpush3.msra.mxu1 %v2510_v5  ;;  %v2683_v5 = vld [vmem:[%s4326_s18 + $0xe0] sm:$0xff] }
 0x82a   : > { %3499 = vmatprep.subr.mxu1 %v2509_v6 }
 0x82b   : > { %3500 = vmatpush3.msra.mxu1 %v2509_v6  ;;  %v2682_v6 = vld [vmem:[%s4326_s18 + $0xd8] sm:$0xff] }
 0x82c   : > { %v4525_v31 = vpop.eup %3680  ;;  %3501 = vmatprep.subr.mxu1 %v2508_v7 }
 0x82d   : > { %v3683_v32 = vpop.eup %3682  ;;  %v2405_v33 = vsel %vm1212_vm7, %v4525_v31, 0.0  ;;  %3502 = vmatpush3.msra.mxu1 %v2508_v7  ;;  %v2681_v7 = vld [vmem:[%s4326_s18 + $0xd0] sm:$0xff] }
 0x82e   : > { %2406 = vadd.xlane.f32.xlu0 %v2405_v33  ;;  %v2238_v34 = vsel %vm1212_vm7, %v3683_v32, 0.0  ;;  %v3685_v35 = vpop.eup %3684  ;;  %3503 = vmatprep.subr.mxu1 %v2507_v46 }
 0x82f   : > { %2239 = vadd.xlane.f32.xlu1 %v2238_v34  ;;  %v1551_v37 = vsel %vm1212_vm7, %v3685_v35, 0.0  ;;  %3504 = vmatpush3.msra.mxu1 %v2507_v46  ;;  %v2680_v46 = vld [vmem:[%s4326_s18 + $0xc8] sm:$0xff] }
 0x830   : > { %3505 = vmatprep.subr.mxu1 %v2506_v12 }
 0x831   : > { %3506 = vmatpush3.msra.mxu1 %v2506_v12  ;;  %v2677_v12 = vld [vmem:[%s4326_s18 + $0xb0] sm:$0xff] }
 0x832   : > { %3507 = vmatprep.subr.mxu1 %v2505_v14 }
 0x833   : > { %1552 = vadd.xlane.f32.xlu1 %v1551_v37  ;;  %3508 = vmatpush3.msra.mxu1 %v2505_v14  ;;  %v2675_v14 = vld [vmem:[%s4326_s18 + $0xa0] sm:$0xff] }
 0x834   : > { %3509 = vmatprep.subr.mxu1 %v2504_v16 }
 0x835   : > { %3510 = vmatpush3.msra.mxu1 %v2504_v16  ;;  %v2673_v16 = vld [vmem:[%s4326_s18 + $0x90] sm:$0xff] }
 0x836   : > { %3511 = vmatprep.subr.mxu1 %v2503_v17 }
 0x837   : > { %3512 = vmatpush3.msra.mxu1 %v2503_v17  ;;  %v2672_v17 = vld [vmem:[%s4326_s18 + $0x88] sm:$0xff] }
 0x844   : > { %1556 = vrot.lane.b32.xlu1 %v4426_v41, %s4013_s7  ;;  %1723 = vrot.lane.b32.xlu0 %v4426_v41, %s4014_s11 }
 0x848   : > { %2076 = vrot.lane.b32.xlu1 %v4420_v36, %s4012_s3 }
 0x84c   : > { %2243 = vrot.lane.b32.xlu1 %v4420_v36, %s4013_s7 }
 0x850   : > { %2410 = vrot.lane.b32.xlu1 %v4420_v36, %s4014_s11 }
 0x8a7   : > { %v1720_v40 = vpop.xlane.xlu0 %1719 }
 0x8ab   : > { %v1908_v38 = vpop.xlane.xlu1 %1907 }
 0x8af   : > { %v2072_v41 = vpop.xlane.xlu0 %2071 }
 0x8b7   : > { %v2407_v45 = vpop.xlane.xlu0 %2406 }
 0x8b8   : > { %v2240_v39 = vpop.xlane.xlu1 %2239 }
 0x8bb   : > { %v1724_v50 = vpop.permute.xlu0 %1723 }
 0x8bc   : > { %v1553_v42 = vpop.xlane.xlu1 %1552 }
 0x8bd   : > { %3686 = vrcp.f32 %v1553_v42 }
 0x8be   : > { %3688 = vrcp.f32 %v1720_v40 }
 0x8bf   : > { %3690 = vrcp.f32 %v1908_v38 }
 0x8c0   : > { %v1557_v44 = vpop.permute.xlu1 %1556  ;;  %3692 = vrcp.f32 %v2072_v41 }
 0x8c1   : > { %3431 = vmatpush3.msra.mxu0 %v1557_v44  ;;  %3694 = vrcp.f32 %v2240_v39 }
 0x8c2   : > { %3440 = vmatprep.subr.mxu0 %v4010_v28  ;;  %3696 = vrcp.f32 %v2407_v45 }
 0x8c4   : > { %v2077_v53 = vpop.permute.xlu1 %2076 }
 0x8c8   : > { %v2244_v56 = vpop.permute.xlu1 %2243 }
 0x8ca   : > { %v3687_v47 = vpop.eup %3686 }
 0x8cb   : > { %v1555_v48 = vmul.f32 %v3687_v47, %v3685_v35  ;;  %v3689_v49 = vpop.eup %3688 }
 0x8cc   : > { %v1722_v51 = vmul.f32 %v3689_v49, %v3675_v20  ;;  %v3691_v52 = vpop.eup %3690  ;;  %v2411_v60 = vpop.permute.xlu1 %2410  ;;  %v2502_v20 = vld [vmem:[%s4324_s15 + $0x8] sm:$0xff]  ;;  %s4819_s15 = sld [smem:[#allocation37_spill]] (!%p3254_p6) }
 0x8cd   : > { %3433 = vmatmul.mubr.msk.f32.vlgmr.msra.gmra.mxu0 %vm1212_vm7, %v1555_v48  ;;  %v1910_v54 = vmul.f32 %v3691_v52, %v3677_v8  ;;  %v3693_v55 = vpop.eup %3692  ;;  %3513 = vmatprep.subr.mxu1 %v2502_v20 }
 0x8ce   : > { %3441 = vmatpush3.msra.mxu0 %v1724_v50  ;;  %3442 = vmatprep.mubr.msk.f32.mxu0 %vm4011_vm4, %v4010_v28  ;;  %v2074_v57 = vmul.f32 %v3693_v55, %v3679_v27  ;;  %v3250_v50 = vld [vmem:[%s4814_s28] ss:$0 sm:$0xff] }
 0x8cf   : > { %3450 = vmatprep.subr.mxu0 %v4010_v28  ;;  %3514 = vmatpush3.msra.mxu1 %v2502_v20  ;;  %v2669_v20 = vld [vmem:[%s4326_s18 + $0x70] sm:$0xff] }
 0x8d0   : > { %3515 = vmatprep.subr.mxu1 %v2501_v21 }
 0x8d1   : > { %3443 = vmatmul.mubr.msk.f32.vlgmr.msra.gmra.mxu0 %vm1212_vm7, %v1722_v51  ;;  %3516 = vmatpush3.msra.mxu1 %v2501_v21  ;;  %v2668_v21 = vld [vmem:[%s4326_s18 + $0x68] sm:$0xff] }
 0x8d2   : > { %3451 = vmatpush3.msra.mxu0 %v4420_v36  ;;  %3452 = vmatprep.mubr.msk.f32.mxu0 %vm4011_vm4, %v4010_v28  ;;  %v3695_v36 = vpop.eup %3694 }
 0x8d3   : > { %3460 = vmatprep.subr.mxu0 %v4010_v28  ;;  %v2242_v58 = vmul.f32 %v3695_v36, %v3683_v32  ;;  %v3697_v59 = vpop.eup %3696 }
 0x8d4   : > { %v2409_v61 = vmul.f32 %v3697_v59, %v4525_v31 }
 0x8d5   : > { %3453 = vmatmul.mubr.msk.f32.vlgmr.msra.gmra.mxu0 %vm1212_vm7, %v1910_v54  ;;  %v3706_v54 = vld [vmem:[#allocation2 + $0x8] sm:$0xff] }
 0x8d6   : > { %3461 = vmatpush3.msra.mxu0 %v2077_v53  ;;  %3462 = vmatprep.mubr.msk.f32.mxu0 %vm4011_vm4, %v4010_v28 }
 0x8d7   : > { %3470 = vmatprep.subr.mxu0 %v4010_v28 }
 0x8d9   : > { %3463 = vmatmul.mubr.msk.f32.vlgmr.msra.gmra.mxu0 %vm1212_vm7, %v2074_v57 }
 0x8da   : > { %3471 = vmatpush3.msra.mxu0 %v2244_v56  ;;  %3472 = vmatprep.mubr.msk.f32.mxu0 %vm4011_vm4, %v4010_v28 }
 0x8db   : > { %3480 = vmatprep.subr.mxu0 %v4010_v28 }
 0x8dd   : > { %3473 = vmatmul.mubr.msk.f32.vlgmr.msra.gmra.mxu0 %vm1212_vm7, %v2242_v58 }
 0x8de   : > { %3481 = vmatpush3.msra.mxu0 %v2411_v60  ;;  %3482 = vmatprep.mubr.msk.f32.mxu0 %vm4011_vm4, %v4010_v28 }
 0x8df   : > { %2699 = vmatprep.subr.mxu0 %v2686_v2 }
 0x8e1   : > { %3483 = vmatmul.mubr.msk.f32.vlgmr.msra.gmra.mxu0 %vm1212_vm7, %v2409_v61 }
 0x8e2   : > { %2763 = vmatprep.mubr.f32.mxu0 %v4010_v28  ;;  %2700 = vmatpush1.msra.mxu0 %v2685_v3 }
 0x8e3   : > { %2701 = vmatprep.subr.mxu0 %v2684_v4 }
 0x8e4   : > { %2702 = vmatpush1.msra.mxu0 %v2683_v5 }
 0x8e5   : > { %2703 = vmatprep.subr.mxu0 %v2682_v6 }
 0x8e6   : > { %2704 = vmatpush1.msra.mxu0 %v2681_v7 }
 0x8e7   : > { %2705 = vmatprep.subr.mxu0 %v2680_v46 }
 0x98d   : > { %v1628_v10 = vpop.f32.mrf.mxu0 }
 0x98f   : > { %v3434_v11 = vpop.f32.mrf.mxu0 }
 0x990   : > { %v2678_v11 = vld [vmem:[%s4326_s18 + $0xb8] sm:$0xff] }
 0x991   : > { %v1795_v13 = vpop.f32.mrf.mxu0 }
 0x993   : > { %v3444_v15 = vpop.f32.mrf.mxu0 }
 0x994   : > { %v2674_v15 = vld [vmem:[%s4326_s18 + $0x98] sm:$0xff] }
 0x995   : > { %v1980_v18 = vpop.f32.mrf.mxu0 }
 0x997   : > { %v3454_v19 = vpop.f32.mrf.mxu0 }
 0x998   : > { %v2670_v19 = vld [vmem:[%s4326_s18 + $0x78] sm:$0xff] }
 0x999   : > { %v2148_v22 = vpop.f32.mrf.mxu0 }
 0x99a   : > { %v3643_v23 = vpack.i.bf16 %v2148_v22, %v4514_v43  ;;  %v2667_v22 = vld [vmem:[%s4326_s18 + $0x60] sm:$0xff] }
 0x99b   : > { %v3464_v24 = vpop.f32.mrf.mxu0 }
 0x99c   : > { %3644 = vrot.lane.b32.xlu0 %v3643_v23, %s4014_s11  ;;  %v2666_v23 = vld [vmem:[%s4326_s18 + $0x58] sm:$0xff]  ;;  %v2665_v24 = vld [vmem:[%s4326_s18 + $0x50] sm:$0xff] }
 0x99d   : > { %v2315_v8 = vpop.f32.mrf.mxu0 }
 0x99e   : > { %v3648_v25 = vpack.i.bf16 %v2315_v8, %v1628_v10  ;;  %v2679_v10 = vld [vmem:[%s4326_s18 + $0xc0] sm:$0xff]  ;;  %v2664_v8 = vld [vmem:[%s4326_s18 + $0x48] sm:$0xff] }
 0x99f   : > { %v3474_v27 = vpop.f32.mrf.mxu0  ;;  %2706 = vmatpush1.msra.mxu0 %v2679_v10 }
 0x9a0   : > { %3649 = vrot.lane.b32.xlu1 %v3648_v25, %s4013_s7  ;;  %2707 = vmatprep.subr.mxu0 %v2678_v11  ;;  %v2663_v25 = vld [vmem:[%s4326_s18 + $0x40] sm:$0xff]  ;;  %v2662_v27 = vld [vmem:[%s4326_s18 + $0x38] sm:$0xff] }
 0x9a1   : > { %v2482_v30 = vpop.f32.mrf.mxu0  ;;  %2708 = vmatpush1.msra.mxu0 %v2677_v12 }
 0x9a2   : > { %v3653_v31 = vpack.i.bf16 %v2482_v30, %v1795_v13  ;;  %v2676_v13 = vld [vmem:[%s4326_s18 + $0xa8] sm:$0xff]  ;;  %v2661_v30 = vld [vmem:[%s4326_s18 + $0x30] sm:$0xff] }
 0x9a3   : > { %v3484_v32 = vpop.f32.mrf.mxu0  ;;  %2709 = vmatprep.subr.mxu0 %v2676_v13 }
 0x9a4   : > { %3654 = vrot.lane.b32.xlu0 %v3653_v31, %s4012_s3  ;;  %2710 = vmatpush1.msra.mxu0 %v2675_v14  ;;  %v2660_v31 = vld [vmem:[%s4326_s18 + $0x28] sm:$0xff]  ;;  %v2659_v32 = vld [vmem:[%s4326_s18 + $0x20] sm:$0xff] }
 0x9a5   : > { %2711 = vmatprep.subr.mxu0 %v2674_v15 }
 0x9a6   : > { %2712 = vmatpush1.msra.mxu0 %v2673_v16 }
 0x9a7   : > { %2713 = vmatprep.subr.mxu0 %v2672_v17 }
 0xa0e   : > { %v3645_v33 = vpop.permute.xlu0 %3644 }
 0xa0f   : > { %v3647_v35 = vunpack.i.h.bf16 %v3645_v33  ;;  %v3646_v37 = vunpack.i.l.bf16 %v3645_v33  ;;  %v2658_v33 = vld [vmem:[%s4326_s18 + $0x18] sm:$0xff] }
 0xa11   : > { %v2498_v40 = vsel %vm1127_vm5, %v1980_v18, %v3647_v35  ;;  %v1811_v41 = vsel %vm1127_vm5, %v4455_v62, %v3646_v37  ;;  %v3707_v62 = vld [vmem:[#allocation2] sm:$0xff]  ;;  %v2671_v18 = vld [vmem:[%s4326_s18 + $0x80] sm:$0xff]  ;;  %v2656_v35 = vld [vmem:[%s4326_s18 + $0x8] sm:$0xff] }
 0xa12   : > { %v3650_v34 = vpop.permute.xlu1 %3649  ;;  %2714 = vmatpush1.msra.mxu0 %v2671_v18  ;;  %v2655_v37 = vld [vmem:[%s4326_s18] sm:$0xff] }
 0xa13   : > { %v3652_v43 = vunpack.i.h.bf16 %v3650_v34  ;;  %v3651_v38 = vunpack.i.l.bf16 %v3650_v34  ;;  %2715 = vmatprep.subr.mxu0 %v2670_v19  ;;  %v2657_v34 = vld [vmem:[%s4326_s18 + $0x10] sm:$0xff]  ;;  %v3251_v19 = vld [vmem:[%s833_s6] ss:$0 sm:$0xff] }
 0xa14   : > { %2716 = vmatpush1.msra.mxu0 %v2669_v20 }
 0xa15   : > { %v1813_v45 = vsel %vm1812_vm9, %v1811_v41, %v3651_v38  ;;  %v2499_v47 = vsel %vm1812_vm9, %v2498_v40, %v3652_v43  ;;  %2717 = vmatprep.subr.mxu0 %v2668_v21  ;;  %v2811_v43 = vld [vmem:[%s4328_s10 + $0xf8] sm:$0xff]  ;;  %v2794_v40 = vld [vmem:[%s4328_s10 + $0x70] sm:$0xff]  ;;  %v2808_v41 = vld [vmem:[%s4328_s10 + $0xe0] sm:$0xff] }
 0xa16   : > { %v3655_v39 = vpop.permute.xlu0 %3654  ;;  %2718 = vmatpush1.msra.mxu0 %v2667_v22  ;;  %v2795_v38 = vld [vmem:[%s4328_s10 + $0x78] sm:$0xff]  ;;  %3332 = vmatprep.subr.mxu1 %v2811_v43 }
 0xa17   : > { %v3657_v42 = vunpack.i.h.bf16 %v3655_v39  ;;  %v3656_v44 = vunpack.i.l.bf16 %v3655_v39  ;;  %2719 = vmatprep.subr.mxu0 %v2666_v23  ;;  %v2810_v39 = vld [vmem:[%s4328_s10 + $0xf0] sm:$0xff]  ;;  %v3252_v22 = vld [vmem:[%s836_s23] ss:$0 sm:$0xff] }
 0xa18   : > { %2720 = vmatpush1.msra.mxu0 %v2665_v24 }
 0xa19   : > { %v1815_v48 = vsel %vm1814_vm10, %v1813_v45, %v3656_v44  ;;  %v2500_v49 = vsel %vm1814_vm10, %v2499_v47, %v3657_v42  ;;  %2721 = vmatprep.subr.mxu0 %v2664_v8  ;;  %v2809_v42 = vld [vmem:[%s4328_s10 + $0xe8] sm:$0xff]  ;;  %v2792_v45 = vld [vmem:[%s4328_s10 + $0x60] sm:$0xff]  ;;  %v2807_v47 = vld [vmem:[%s4328_s10 + $0xd8] sm:$0xff] }
 0xa1a   : > { %3517 = vmatprep.mubr.f32.mxu1 %v1815_v48  ;;  %2722 = vmatpush1.msra.mxu0 %v2663_v25  ;;  %v2793_v44 = vld [vmem:[%s4328_s10 + $0x68] sm:$0xff]  ;;  %v2791_v48 = vld [vmem:[%s4328_s10 + $0x58] sm:$0xff] }
 0xa1b   : > { %3518 = vmatmul.mubr.f32.vlgmr.msra.gmra.mxu1 %v2500_v49  ;;  %2723 = vmatprep.subr.mxu0 %v2662_v27  ;;  %v2806_v49 = vld [vmem:[%s4328_s10 + $0xd0] sm:$0xff] }
 0xa1c   : > { %2724 = vmatpush1.msra.mxu0 %v2661_v30  ;;  %3333 = vmatpush3.msra.mxu1 %v2795_v38  ;;  %v2799_v30 = vld [vmem:[%s4328_s10 + $0x98] sm:$0xff] }
 0xa1d   : > { %2725 = vmatprep.subr.mxu0 %v2660_v31  ;;  %3334 = vmatprep.subr.mxu1 %v2810_v39  ;;  %v2783_v31 = vld [vmem:[%s4328_s10 + $0x18] sm:$0xff] }
 0xa1e   : > { %2726 = vmatpush1.msra.mxu0 %v2659_v32  ;;  %3335 = vmatpush3.msra.mxu1 %v2794_v40  ;;  %v2798_v32 = vld [vmem:[%s4328_s10 + $0x90] sm:$0xff] }
 0xa1f   : > { %2727 = vmatprep.subr.mxu0 %v2658_v33  ;;  %3336 = vmatprep.subr.mxu1 %v2809_v42  ;;  %v2797_v33 = vld [vmem:[%s4328_s10 + $0x88] sm:$0xff] }
 0xa20   : > { %2728 = vmatpush1.msra.mxu0 %v2657_v34  ;;  %3337 = vmatpush3.msra.mxu1 %v2793_v44  ;;  %v2781_v34 = vld [vmem:[%s4328_s10 + $0x8] sm:$0xff] }
 0xa21   : > { %2729 = vmatprep.subr.mxu0 %v2656_v35  ;;  %3338 = vmatprep.subr.mxu1 %v2808_v41  ;;  %v2796_v35 = vld [vmem:[%s4328_s10 + $0x80] sm:$0xff] }
 0xa22   : > { %2730 = vmatpush1.msra.mxu0 %v2655_v37  ;;  %3339 = vmatpush3.msra.mxu1 %v2792_v45  ;;  %v2780_v37 = vld [vmem:[%s4328_s10] sm:$0xff] }
 0xa23   : > { %3340 = vmatprep.subr.mxu1 %v2807_v47 }
 0xa24   : > { %3341 = vmatpush3.msra.mxu1 %v2791_v48 }
 0xa25   : > { %3342 = vmatprep.subr.mxu1 %v2806_v49 }
 0xadb   : > { %v3519_v51 = vpop.f32.mrf.mxu1 }
 0xadc   : > { %v2596_v52 = vadd.f32 %v3519_v51, %v3250_v50  ;;  %v2805_v51 = vld [vmem:[%s4328_s10 + $0xc8] sm:$0xff] }
 0xadd   : > { %v2590_v53 = vpop.f32.mrf.mxu1 }
 0xade   : > { %v4593_v55 = vadd.f32 %v3706_v54, %v2596_v52  ;;  %v2591_v56 = vadd.f32 %v3250_v50, %v2590_v53  ;;  %v2790_v50 = vld [vmem:[%s4328_s10 + $0x50] sm:$0xff]  ;;  %v2789_v52 = vld [vmem:[%s4328_s10 + $0x48] sm:$0xff]  ;;  %v2804_v53 = vld [vmem:[%s4328_s10 + $0xc0] sm:$0xff] }
 0xadf   : > { %3343 = vmatpush3.msra.mxu1 %v2790_v50  ;;  %v2788_v54 = vld [vmem:[%s4328_s10 + $0x40] sm:$0xff] }
 0xae0   : > { %v4595_v57 = vadd.f32 %v3707_v62, %v2591_v56  ;;  %2605 = vadd.xlane.f32.xlu0 %v4593_v55  ;;  %3344 = vmatprep.subr.mxu1 %v2805_v51  ;;  %v2803_v56 = vld [vmem:[%s4328_s10 + $0xb8] sm:$0xff] }
 0xae1   : > { %3345 = vmatpush3.msra.mxu1 %v2789_v52  ;;  %v2787_v62 = vld [vmem:[%s4328_s10 + $0x38] sm:$0xff] }
 0xae2   : > { %2603 = vadd.xlane.f32.xlu1 %v4595_v57  ;;  %3346 = vmatprep.subr.mxu1 %v2804_v53 }
 0xae3   : > { %3347 = vmatpush3.msra.mxu1 %v2788_v54 }
 0xae4   : > { %3348 = vmatprep.subr.mxu1 %v2803_v56 }
 0xae5   : > { %3349 = vmatpush3.msra.mxu1 %v2787_v62 }
 0xb69   : > { %v2606_v36 = vpop.xlane.xlu0 %2605 }
 0xb6a   : > { %v2608_v59 = vmul.f32 0.0078125, %v2606_v36  ;;  %v2802_v36 = vld [vmem:[%s4328_s10 + $0xb0] sm:$0xff] }
 0xb6b   : > { %v2604_v58 = vpop.xlane.xlu1 %2603  ;;  %3350 = vmatprep.subr.mxu1 %v2802_v36 }
 0xb6c   : > { %v2607_v60 = vmul.f32 0.0078125, %v2604_v58  ;;  %v4603_v63 = vsub.f32 %v4593_v55, %v2608_v59  ;;  %v2786_v58 = vld [vmem:[%s4328_s10 + $0x30] sm:$0xff]  ;;  %v2801_v59 = vld [vmem:[%s4328_s10 + $0xa8] sm:$0xff] }
 0xb6d   : > { %3351 = vmatpush3.msra.mxu1 %v2786_v58 }
 0xb6e   : > { %v4600_v61 = vsub.f32 %v4595_v57, %v2607_v60  ;;  %v2612_v1 = vmul.f32 %v4603_v63, %v4603_v63  ;;  %v2785_v60 = vld [vmem:[%s4328_s10 + $0x28] sm:$0xff]  ;;  %3352 = vmatprep.subr.mxu1 %v2801_v59  ;;  %v2644_v24 = vmul.f32 %v3251_v19, %v4603_v63  ;;  %v2782_v63 = vld [vmem:[%s4328_s10 + $0x10] sm:$0xff] }
 0xb6f   : > { %3353 = vmatpush3.msra.mxu1 %v2785_v60 }
 0xb70   : > { %v2611_v0 = vmul.f32 %v4600_v61, %v4600_v61  ;;  %v2643_v20 = vmul.f32 %v3251_v19, %v4600_v61 }
 0xb72   : > { %2613 = vadd.xlane.f32.xlu0 %v2611_v0  ;;  %v2800_v0 = vld [vmem:[%s4328_s10 + $0xa0] sm:$0xff] }
 0xb73   : > { %3354 = vmatprep.subr.mxu1 %v2800_v0 }
 0xb76   : > { %2615 = vadd.xlane.f32.xlu0 %v2612_v1  ;;  %v2784_v1 = vld [vmem:[%s4328_s10 + $0x20] sm:$0xff] }
 0xb77   : > { %3355 = vmatpush3.msra.mxu1 %v2784_v1 }
 0xb78   : > { %3356 = vmatprep.subr.mxu1 %v2799_v30 }
 0xb79   : > { %3357 = vmatpush3.msra.mxu1 %v2783_v31 }
 0xb7a   : > { %3358 = vmatprep.subr.mxu1 %v2798_v32 }
 0xb7b   : > { %3359 = vmatpush3.msra.mxu1 %v2782_v63 }
 0xb7c   : > { %3360 = vmatprep.subr.mxu1 %v2797_v33 }
 0xb7d   : > { %3361 = vmatpush3.msra.mxu1 %v2781_v34 }
 0xb7e   : > { %3362 = vmatprep.subr.mxu1 %v2796_v35 }
 0xb7f   : > { %3363 = vmatpush3.msra.mxu1 %v2780_v37 }
 0xbfb   : > { %v2614_v2 = vpop.xlane.xlu0 %2613 }
 0xbfc   : > { %v2617_v3 = vmul.f32 0.007874016, %v2614_v2 }
 0xbfe   : > { %3698 = vrsqrt.f32 %v2617_v3  ;;  %vm2621_vm11 = vcmp.eq.f32.partialorder %v2617_v3, inf  ;;  %v2624_v46 = vand.u32 2147483648, %v2617_v3  ;;  %vm2623_vm12 = vcmp.eq.f32.partialorder %v2617_v3, 0.0 }
 0xbff   : > { %v2616_v4 = vpop.xlane.xlu0 %2615 }
 0xc00   : > { %v2618_v5 = vmul.f32 0.007874016, %v2616_v4 }
 0xc02   : > { %3700 = vrsqrt.f32 %v2618_v5  ;;  %vm2628_vm13 = vcmp.eq.f32.partialorder %v2618_v5, inf  ;;  %v2631_v15 = vand.u32 2147483648, %v2618_v5  ;;  %vm2630_vm14 = vcmp.eq.f32.partialorder %v2618_v5, 0.0 }
 0xc0b   : > { %v3699_v6 = vpop.eup %3698 }
 0xc0c   : > { %v2620_v7 = vmul.f32 %v3699_v6, %v2617_v3 }
 0xc0e   : > { %v2622_v10 = vsel %vm2621_vm11, %v2617_v3, %v2620_v7 }
 0xc0f   : > { %v3701_v11 = vpop.eup %3700  ;;  %v2625_v12 = vsel %vm2623_vm12, %v2624_v46, %v2622_v10 }
 0xc10   : > { %v2633_v13 = vadd.f32 1e-06, %v2625_v12  ;;  %v2627_v14 = vmul.f32 %v3701_v11, %v2618_v5 }
 0xc12   : > { %3702 = vrcp.f32 %v2633_v13  ;;  %v2629_v16 = vsel %vm2628_vm13, %v2618_v5, %v2627_v14 }
 0xc13   : > { %v2632_v17 = vsel %vm2630_vm14, %v2631_v15, %v2629_v16 }
 0xc14   : > { %v2634_v18 = vadd.f32 1e-06, %v2632_v17 }
 0xc16   : > { %3704 = vrcp.f32 %v2634_v18 }
 0xc1f   : > { %v3703_v21 = vpop.eup %3702 }
 0xc20   : > { %v2645_v23 = vmul.f32 %v3703_v21, %v2643_v20 }
 0xc22   : > { %v2653_v8 = vadd.f32 %v3252_v22, %v2645_v23 }
 0xc23   : > { %v3705_v25 = vpop.eup %3704 }
 0xc24   : > { %2764 = vmatmul.mubr.f32.vlgmr.msra.gmra.mxu0 %v2653_v8  ;;  %v2646_v27 = vmul.f32 %v3705_v25, %v2644_v24 }
 0xc25   : > { %2769 = vmatprep.mubr.f32.mxu0 %v4010_v28  ;;  %v2687_v28 = vld [vmem:[%s4300_s12] sm:$0x3] }
 0xc26   : > { %v2654_v61 = vadd.f32 %v3252_v22, %v2646_v27  ;;  %v2692_v43 = vrot.slane %v2687_v28, %v4413_v29  ;;  %v2696_v38 = vrot.slane %v2687_v28, %v966_v26 }
 0xc28   : > { %2770 = vmatmul.mubr.f32.gmra.mxu0 %v2654_v61 }
 0xce4   : > { %v2765_v39 = vpop.f32.mrf.mxu0 }
 0xce5   : > { %v2766_v40 = vadd.f32 %v2765_v39, %v2692_v43 }
 0xce6   : > { %v2767_v42 = vpop.f32.mrf.mxu0 }
 0xce7   : > { %v2768_v44 = vadd.f32 %v2767_v42, %v2696_v38  ;;  %v2776_v47 = vmax.f32 %v2766_v40, 0.0 }
 0xce8   : > { %v2771_v41 = vpop.f32.mrf.mxu0 }
 0xce9   : > { %v2777_v45 = vmax.f32 %v2768_v44, 0.0  ;;  %v2772_v48 = vadd.f32 %v2771_v41, %v2692_v43 }
 0xcea   : > { %v2773_v49 = vpop.f32.mrf.mxu0 }
 0xceb   : > { %v2774_v50 = vadd.f32 %v2773_v49, %v2696_v38  ;;  %2883 = vmatprep.mubr.f32.mxu1 %v2777_v45  ;;  %v2778_v52 = vmax.f32 %v2772_v48, 0.0 }
 0xcec   : > { %2884 = vmatmul.mubr.f32.vlgmr.msra.gmra.mxu1 %v2776_v47 }
 0xced   : > { %v2779_v51 = vmax.f32 %v2774_v50, 0.0 }
 0xcef   : > { %2888 = vmatprep.mubr.f32.mxu1 %v2779_v51 }
 0xcf0   : > { %2889 = vmatmul.mubr.f32.gmra.mxu1 %v2778_v52 }
 0xdac   : > { %v3364_v29 = vpop.f32.mrf.mxu1 }
 0xdae   : > { %v3365_v26 = vpop.f32.mrf.mxu1 }
 0xdaf   : > { %v3366_v53 = vadd.f32 %v3365_v26, %v3364_v29 }
 0xdb0   : > { %v3367_v54 = vpop.f32.mrf.mxu1 }
 0xdb1   : > { %v2886_v56 = vadd.f32 %v3366_v53, %v3253_v9 }
 0xdb2   : > { %v3368_v62 = vpop.f32.mrf.mxu1 }
 0xdb3   : > { %v2894_v36 = vadd.f32 %v2886_v56, %v4595_v57  ;;  %v3369_v58 = vadd.f32 %v3368_v62, %v3367_v54 }
 0xdb5   : > { %2896 = vst [vmem:[#allocation2] sm:$0xff] %v2894_v36  ;;  %v2891_v59 = vadd.f32 %v3369_v58, %v3253_v9  ;;  %2901 = sbr.rel (%p3254_p6) target bundleno = 3841 (0xf01), region = 120 }
 0xdb7   : > { %v2895_v60 = vadd.f32 %v2891_v59, %v4593_v55 }
 0xdb9   : > { %2897 = vst [vmem:[#allocation2 + $0x8] sm:$0xff] %v2895_v60 }
 0xdba   : > { %2904 = vadd.xlane.f32.xlu0 %v2894_v36  ;;  %v3255_v23 = vld [vmem:[%s4819_s15] ss:$0 sm:$0xff] }
 0xdbb   : > { %v3256_v25 = vld [vmem:[%s4820_s1] ss:$0 sm:$0xff] }
 0xdbe   : > { %2906 = vadd.xlane.f32.xlu0 %v2895_v60 }
 0xe43   : > { %v2905_v0 = vpop.xlane.xlu0 %2904 }
 0xe44   : > { %v2908_v1 = vmul.f32 0.0078125, %v2905_v0 }
 0xe46   : > { %v2910_v2 = vsub.f32 %v2894_v36, %v2908_v1 }
 0xe47   : > { %v2907_v3 = vpop.xlane.xlu0 %2906 }
 0xe48   : > { %v2909_v4 = vmul.f32 0.0078125, %v2907_v3  ;;  %v2912_v5 = vmul.f32 %v2910_v2, %v2910_v2  ;;  %v2944_v24 = vmul.f32 %v3255_v23, %v2910_v2 }
 0xe4a   : > { %v2911_v6 = vsub.f32 %v2895_v60, %v2909_v4  ;;  %2914 = vadd.xlane.f32.xlu1 %v2912_v5 }
 0xe4c   : > { %v2913_v57 = vmul.f32 %v2911_v6, %v2911_v6  ;;  %v2945_v61 = vmul.f32 %v3255_v23, %v2911_v6 }
 0xe4e   : > { %2916 = vadd.xlane.f32.xlu1 %v2913_v57 }
 0xed3   : > { %v2915_v7 = vpop.xlane.xlu1 %2914 }
 0xed4   : > { %v2918_v46 = vmul.f32 0.007874016, %v2915_v7 }
 0xed6   : > { %3708 = vrsqrt.f32 %v2918_v46  ;;  %vm2922_vm15 = vcmp.eq.f32.partialorder %v2918_v46, inf  ;;  %v2925_v13 = vand.u32 2147483648, %v2918_v46  ;;  %vm2924_vm0 = vcmp.eq.f32.partialorder %v2918_v46, 0.0 }
 0xed7   : > { %v2917_v55 = vpop.xlane.xlu1 %2916 }
 0xed8   : > { %v2919_v10 = vmul.f32 0.007874016, %v2917_v55 }
 0xeda   : > { %3710 = vrsqrt.f32 %v2919_v10  ;;  %vm2929_vm1 = vcmp.eq.f32.partialorder %v2919_v10, inf  ;;  %v2932_v19 = vand.u32 2147483648, %v2919_v10  ;;  %vm2931_vm2 = vcmp.eq.f32.partialorder %v2919_v10, 0.0 }
 0xee3   : > { %v3709_v11 = vpop.eup %3708 }
 0xee4   : > { %v2921_v12 = vmul.f32 %v3709_v11, %v2918_v46 }
 0xee6   : > { %v2923_v14 = vsel %vm2922_vm15, %v2918_v46, %v2921_v12 }
 0xee7   : > { %v3711_v15 = vpop.eup %3710  ;;  %v2926_v16 = vsel %vm2924_vm0, %v2925_v13, %v2923_v14 }
 0xee8   : > { %v2934_v17 = vadd.f32 1e-06, %v2926_v16  ;;  %v2928_v18 = vmul.f32 %v3711_v15, %v2919_v10 }
 0xeea   : > { %3712 = vrcp.f32 %v2934_v17  ;;  %v2930_v20 = vsel %vm2929_vm1, %v2919_v10, %v2928_v18 }
 0xeeb   : > { %v2933_v21 = vsel %vm2931_vm2, %v2932_v19, %v2930_v20 }
 0xeec   : > { %v2935_v22 = vadd.f32 1e-06, %v2933_v21 }
 0xeee   : > { %3714 = vrcp.f32 %v2935_v22 }
 0xef7   : > { %v3713_v8 = vpop.eup %3712 }
 0xef8   : > { %v2946_v27 = vmul.f32 %v3713_v8, %v2944_v24 }
 0xefa   : > { %v2954_v30 = vadd.f32 %v3256_v25, %v2946_v27 }
 0xefb   : > { %v3715_v31 = vpop.eup %3714 }
 0xefc   : > { %2956 = vst [vmem:[#allocation13] sm:$0xff] %v2954_v30  ;;  %v2947_v32 = vmul.f32 %v3715_v31, %v2945_v61 }
 0xefe   : > { %v2955_v63 = vadd.f32 %v3256_v25, %v2947_v32 }
 0xf00   : > { %2957 = vst [vmem:[#allocation13 + $0x8] sm:$0xff] %v2955_v63 }
 0xf01 PF: > { %p3576_p13 = scmp.eq.s32.totalorder %s4132_s27, 1  ;;  %s4015_s4 = smov [#allocation13]  }
 0xf02   : > { %s2967_s8 = sshll.u32 %s4015_s4, 4  ;;  %s2968_s8 = int_to_ptr.vmem [resolvable:$true] %s2967_s8 }
 0xf03   : > { %s3908_s19 = scalar_lea.vmem %s2968_s8, 256  ;;  %p3915_p7 = scmp.lt.s32.totalorder %s2968_s8, %s2968_s8 }
 0xf04   : > { %p3909_p2 = scmp.ne.s32.totalorder %s2968_s8, %s3908_s19  ;;  %p3916_p9 = scmp.lt.s32.totalorder %s3908_s19, %s3908_s19 }
 0xf06   : > { %p3910_p5 = pnand %p3909_p2, %p3576_p13  ;;  %p3917_p10 = por %p3916_p9, %p3915_p7 }
 0xf08   : > { %p3911_p11 = pneg %p3910_p5 }
 0xf0a   : > { %p3918_p4 = pnand %p3917_p10, %p3911_p11 }
 0xf0c   : > { %3921 = shalt.err (!%p3918_p4)
}
 0xf0d   : > { %s4016_s2 = smov 128   ;;  %s4017_s16 = smov 8  }
 0xf0e   : > { %s4821_s11 = sld [smem:[#allocation39_spill]] }
 0xf14   : > { %3545 = dma.vmem_to_hbm [thread:$0]  (%p3576_p13), %s2968_s8, 256, %s4821_s11, [#allocation5], %s4016_s2, %s4016_s2, %s4017_s16  }
 0xf15   : > { %3969 = dma.done.wait (%p3576_p13), [#allocation5], 256  }
 0xf16   : > { %3971 = vsyncadd (%p3576_p13), [#allocation5], 4294967040 }
 0xf17 PF: > { %s4822_s29 = sld [smem:[#allocation20_spill]]  ;;  %s4826_s21 = smov %s3978_s22 }
 0xf18   : > { %s4823_s13 = sld [smem:[#allocation18_spill]]  ;;  %s4828_s24 = smov %s3990_s25 }
 0xf19   : > { %s4824_s23 = sld [smem:[#allocation22_spill]] }
 0xf1a   : > { %s4825_s28 = sld [smem:[#allocation21_spill]] }
 0xf1d   : > { %s29_s26 = sadd.s32 1, %s4822_s29  }
 0xf1e   : > { %p26_p0 = scmp.ge.s32.totalorder %s29_s26, 4   ;;  %s4827_s22 = smov %s4823_s13 }
 0xf20   : > { %s4829_s25 = smov %s4825_s28  ;;  %28 = sbr.rel (!%p26_p0) target bundleno = 23 (0x17), region = 204 }
 0xf25   :  { %2983 = vsyncpa [#allocation4], 1 }
 0xf26   :  { %2985 = vsyncpa [#allocation4 + $0x1], 1 }
 0xf27   :  { %2986 = vsyncpa [#allocation7], 1 }
 0xf28   :  { %2987 = vsyncpa [#allocation5], 1 }
 0xf29   :  { %2989 = vsyncpa [#allocation5 + $0x1], 1 }

</bundles_post_ra>
